<compile_context>
chip_gen: v5e
topology: v5e:2x2
jax: 0.10.0
libtpu: 0.0.40
codegen_flags: <defaults>
</compile_context>

<pallas_src>
import jax
import jax.numpy as jnp
import numpy as np
from jax.experimental import pallas as pl
from jax.experimental.pallas import tpu as pltpu


# ----------------------------------------------------------------------------------
# Kernel A: M-tiled matmul + bias -> bf16 (folded conv1 ∘ conv2 ∘ [W_ih_f | W_ih_b]).
# Output last dim = 8H (multiple of 128) -> lane-dense, unmasked stores.
# ----------------------------------------------------------------------------------
def gates_matmul_kernel(x_ref, w_ref, b_ref, o_ref):
    acc = jnp.dot(x_ref[...], w_ref[...], preferred_element_type=jnp.float32)
    o_ref[...] = (acc + b_ref[...]).astype(o_ref.dtype)


def pallas_gates_matmul(x2d, w, b, *, tm=512):
    M, K = x2d.shape
    N = w.shape[1]
    tm = min(tm, M)
    grid = (pl.cdiv(M, tm),)
    return pl.pallas_call(
        gates_matmul_kernel,
        out_shape=jax.ShapeDtypeStruct((M, N), jnp.bfloat16),
        grid_spec=pltpu.PrefetchScalarGridSpec(
            num_scalar_prefetch=0,
            grid=grid,
            in_specs=[pl.BlockSpec((tm, K), lambda i: (i, 0)),
                      pl.BlockSpec((K, N), lambda i: (0, 0)),
                      pl.BlockSpec((1, N), lambda i: (0, 0))],
            out_specs=pl.BlockSpec((tm, N), lambda i: (i, 0)),
        ),
        compiler_params=pltpu.CompilerParams(
            dimension_semantics=("parallel",),
            vmem_limit_bytes=64 * 1024 * 1024),
    )(x2d, w, b)


# ----------------------------------------------------------------------------------
# Kernel B: fused bidirectional (packed-semantics) LSTM recurrence + in-place
# streaming LayerNorm + block-diagonal reduce_h/reduce_c heads.
# ----------------------------------------------------------------------------------
def _sigmoid(x):
    # exp -> EUP; approximate reciprocal -> single EUP vrcp (no VALU Newton step).
    return pl.reciprocal(1.0 + jnp.exp(-x), approx=True)


def bilstm_encoder_kernel(
    # inputs
    gates_ref,   # (T, bb, 8H) bf16  precomputed input-side gate pre-activations
    lens_ref,    # (bb, 1)     int32 reduced sequence lengths
    w_hh_ref,    # (2H, 8H)    bf16  block-diag [W_hh_f^T (+) W_hh_b^T]
    gamma_ref,   # (1, 2H)     f32   LayerNorm weight
    beta_ref,    # (1, 2H)     f32   LayerNorm bias
    w_red_ref,   # (4H, 2H)    bf16  block-diag [reduce_h^T (+) reduce_c^T]
    b_red_ref,   # (1, 2H)     f32
    # outputs
    enc_ref,     # (T, bb, 2H) f32   layer-normed encoder outputs (time-major)
    hc_ref,      # (bb, 2H)    f32   [relu(reduce_h) | relu(reduce_c)]
):
    T, B, _ = gates_ref.shape
    H = w_hh_ref.shape[0] // 2
    H4 = 4 * H                           # 128-lane aligned for H=32

    lens = lens_ref[...]                 # (B, 1) int32
    w_hh = w_hh_ref[...]                 # hoisted out of the recurrence

    def step(r, carry):
        h_f, c_f, h_b, c_b = carry
        t_f = r
        t_b = T - 1 - r

        # one fused block-diagonal recurrent matmul for BOTH directions
        z = jnp.concatenate([h_f, h_b], axis=1).astype(jnp.bfloat16)      # (B, 2H)
        rec = jnp.dot(z, w_hh, preferred_element_type=jnp.float32)        # (B, 8H)
        g_f = rec[:, :H4] + gates_ref[t_f][:, :H4].astype(jnp.float32)
        g_b = rec[:, H4:] + gates_ref[t_b][:, H4:].astype(jnp.float32)

        def cell(g, c):
            i_g = _sigmoid(g[:, 0:H])
            f_g = _sigmoid(g[:, H:2 * H])
            g_g = jnp.tanh(g[:, 2 * H:3 * H])
            o_g = _sigmoid(g[:, 3 * H:4 * H])
            c_new = f_g * c + i_g * g_g
            return o_g * jnp.tanh(c_new), c_new

        hf_new, cf_new = cell(g_f, c_f)
        hb_new, cb_new = cell(g_b, c_b)

        # packed-sequence semantics: freeze state past each row's length
        vf = t_f < lens                                                   # (B,1) bool
        vb = t_b < lens
        h_f = jnp.where(vf, hf_new, h_f)
        c_f = jnp.where(vf, cf_new, c_f)
        h_b = jnp.where(vb, hb_new, h_b)
        c_b = jnp.where(vb, cb_new, c_b)

        # write hidden states straight into the output halves (no scratch buffers);
        # padded timesteps stay zero (== pad_packed_sequence).
        enc_ref[t_f, :, 0:H] = jnp.where(vf, hf_new, 0.0)
        enc_ref[t_b, :, H:2 * H] = jnp.where(vb, hb_new, 0.0)
        return h_f, c_f, h_b, c_b

    zeros = jnp.zeros((B, H), jnp.float32)
    carry = (zeros, zeros, zeros, zeros)

    # manual unroll-by-2: two independent step bodies per iteration give the scheduler
    # work to overlap the small latency-bound recurrent matmuls.
    def step2(rr, carry):
        return step(2 * rr + 1, step(2 * rr, carry))

    carry = jax.lax.fori_loop(0, T // 2, step2, carry)
    if T % 2:
        carry = step(T - 1, carry)
    h_f, c_f, h_b, c_b = carry

    # -------- nn.LayerNorm(2H): streaming, in place over enc_ref (no big temp) -------
    gamma = gamma_ref[...]
    beta = beta_ref[...]

    def ln_step(t, c):
        row = enc_ref[t]                                                  # (B, 2H)
        mu = jnp.mean(row, axis=-1, keepdims=True)
        var = jnp.mean((row - mu) ** 2, axis=-1, keepdims=True)
        enc_ref[t] = (row - mu) * jax.lax.rsqrt(var + 1e-5) * gamma + beta
        return c

    jax.lax.fori_loop(0, T, ln_step, 0)

    # -------- fused reduce_h / reduce_c heads (one block-diag matmul, 4H=128 lanes) ---
    hc_in = jnp.concatenate([h_f, h_b, c_f, c_b], axis=1).astype(jnp.bfloat16)  # (B,4H)
    hc = jnp.dot(hc_in, w_red_ref[...], preferred_element_type=jnp.float32) + b_red_ref[...]
    hc_ref[...] = jnp.maximum(hc, 0.0)                                    # F.relu


def pallas_bilstm_encoder(gates, lens, prep, *, batch_block=None):
    """gates: (T, B, 8H) bf16 time-major; lens: (B, 1) int32."""
    T, B, G = gates.shape
    H = prep["hidden_dim"]
    bb = B if batch_block is None else batch_block   # production (v7x): bb multiple of 8
    assert B % bb == 0, "batch_block must divide the batch"
    grid = (B // bb,)

    in_specs = [
        pl.BlockSpec((T, bb, G), lambda i: (0, i, 0)),
        pl.BlockSpec((bb, 1), lambda i: (i, 0)),
        pl.BlockSpec((2 * H, G), lambda i: (0, 0)),
        pl.BlockSpec((1, 2 * H), lambda i: (0, 0)),
        pl.BlockSpec((1, 2 * H), lambda i: (0, 0)),
        pl.BlockSpec((4 * H, 2 * H), lambda i: (0, 0)),
        pl.BlockSpec((1, 2 * H), lambda i: (0, 0)),
    ]
    out_specs = (
        pl.BlockSpec((T, bb, 2 * H), lambda i: (0, i, 0)),
        pl.BlockSpec((bb, 2 * H), lambda i: (i, 0)),
    )
    return pl.pallas_call(
        bilstm_encoder_kernel,
        out_shape=(jax.ShapeDtypeStruct((T, B, 2 * H), jnp.float32),
                   jax.ShapeDtypeStruct((B, 2 * H), jnp.float32)),
        grid_spec=pltpu.PrefetchScalarGridSpec(
            num_scalar_prefetch=0, grid=grid,
            in_specs=in_specs, out_specs=out_specs),
        compiler_params=pltpu.CompilerParams(
            dimension_semantics=("parallel",),
            vmem_limit_bytes=64 * 1024 * 1024),
    )(gates, lens, prep["w_hh"], prep["gamma"], prep["beta"],
      prep["w_red"], prep["b_red"])


# ----------------------------------------------------------------------------------
# Wrapper: full LSTMEncoder.forward (jit-able, no host syncs)
# ----------------------------------------------------------------------------------
def lstm_encoder_forward(prep, x, seq_lens, config):
    """x: (B, T_in, wav2vec2_emb_dim) f32, seq_lens: (B,) int32.
    Returns enc_out (B, T2, 2H), (h_reduced, c_reduced) each (B, H), enc_mask (B, T2).
    NOTE: PyTorch's pad_packed_sequence trims time to max(reduced_seq_lens); we keep the
    static T2 plus the mask so the forward stays jit-able (identical when the longest
    sequence is unpadded, as here)."""
    B, T_in, _ = x.shape
    k0, k1 = config["kernel_size"]
    s0, s1 = config["stride"]
    d0, d1 = config["dilation"]
    H = prep["hidden_dim"]
    k_eff, s_eff = prep["k_eff"], prep["s_eff"]

    T1 = (T_in - d0 * (k0 - 1) - 1) // s0 + 1
    T2 = (T1 - d1 * (k1 - 1) - 1) // s1 + 1

    # reduced sequence lengths (matches the PyTorch float-div + .long() truncation)
    r1 = (seq_lens - d0 * (k0 - 1) - 1) // s0 + 1
    red = ((r1 - d1 * (k1 - 1) - 1) // s1 + 1).astype(jnp.int32)

    # single time-major bf16 unfold of the raw input (XLA layout plumbing); feeds the
    # composed conv1∘conv2∘W_ih matmul -> no conv intermediates in HBM at all.
    x_tm = jnp.swapaxes(x, 0, 1).astype(jnp.bfloat16)                  # (T_in, B, E)
    taps = [x_tm[off: off + (T2 - 1) * s_eff + 1: s_eff] for off in range(k_eff)]
    xu = jnp.concatenate(taps, axis=-1)                                # (T2, B, k_eff*E)

    gates2d = pallas_gates_matmul(xu.reshape(T2 * B, xu.shape[-1]),
                                  prep["w_in"], prep["b_in"])          # (T2*B, 8H) bf16
    gates = gates2d.reshape(T2, B, 8 * H)

    enc_tm, hc = pallas_bilstm_encoder(gates, red.reshape(B, 1), prep)
    enc_out = jnp.swapaxes(enc_tm, 0, 1)                               # (B, T2, 2H)

    h_reduced = hc[:, :H]
    c_reduced = hc[:, H:]
    enc_mask = jnp.arange(T2, dtype=jnp.int32)[None, :] < red[:, None]
    return enc_out, (h_reduced, c_reduced), enc_mask


# ----------------------------------------------------------------------------------
# Parameters
# ----------------------------------------------------------------------------------
def init_raw_params(key, config):
    """PyTorch-layout parameters (deterministic)."""
    E = config["wav2vec2_emb_dim"]
    C1, C2 = config["num_channels"]
    H = config["hidden_dim"]
    K1, K2 = config["kernel_size"]
    ks = jax.random.split(key, 18)

    def u(k, shape, s=0.1):
        return jax.random.uniform(k, shape, jnp.float32, -s, s)

    return {
        "conv1_w": u(ks[0], (C1, E, K1)),  "conv1_b": u(ks[1], (C1,)),
        "conv2_w": u(ks[2], (C2, C1, K2)), "conv2_b": u(ks[3], (C2,)),
        "w_ih_f": u(ks[4], (4 * H, C2)),   "w_hh_f": u(ks[5], (4 * H, H)),
        "b_ih_f": u(ks[6], (4 * H,)),      "b_hh_f": u(ks[7], (4 * H,)),
        "w_ih_b": u(ks[8], (4 * H, C2)),   "w_hh_b": u(ks[9], (4 * H, H)),
        "b_ih_b": u(ks[10], (4 * H,)),     "b_hh_b": u(ks[11], (4 * H,)),
        "ln_gamma": 1.0 + u(ks[12], (2 * H,), 0.05),
        "ln_beta": u(ks[13], (2 * H,), 0.05),
        "reduce_h_w": u(ks[14], (H, 2 * H)), "reduce_h_b": u(ks[15], (H,)),
        "reduce_c_w": u(ks[16], (H, 2 * H)), "reduce_c_b": u(ks[17], (H,)),
    }


def prepare_params(raw, config):
    """Fold / pre-transpose parameters for the kernels (runs once)."""
    HI = jax.lax.Precision.HIGHEST
    E = config["wav2vec2_emb_dim"]
    C1, C2 = config["num_channels"]
    H = config["hidden_dim"]
    K1, K2 = config["kernel_size"]
    s0, s1 = config["stride"]
    d0, d1 = config["dilation"]

    # conv1 -> conv2 -> LSTM input projection has no nonlinearity between stages, so the
    # chain is affine in x: fold it into one composed conv (K_eff taps, stride s0*s1).
    k_eff = d0 * (K1 - 1) + s0 * d1 * (K2 - 1) + 1
    s_eff = s0 * s1
    w_eff = jnp.zeros((k_eff, E, C2), jnp.float32)
    for k2 in range(K2):
        for k1 in range(K1):
            off = d0 * k1 + s0 * d1 * k2
            w_eff = w_eff.at[off].add(
                jnp.matmul(raw["conv1_w"][:, :, k1].T, raw["conv2_w"][:, :, k2].T,
                           precision=HI))
    b_eff = raw["conv2_b"] + jnp.einsum("oik,i->o", raw["conv2_w"], raw["conv1_b"],
                                        precision=HI)

    # ... then fold the (bi-directional) LSTM input projection on top.
    w_ih = jnp.concatenate([raw["w_ih_f"].T, raw["w_ih_b"].T], axis=1)       # (C2, 8H)
    w_in = jnp.matmul(w_eff.reshape(k_eff * E, C2), w_ih, precision=HI)      # (K_eff*E, 8H)
    b_in = (jnp.matmul(b_eff[None, :], w_ih, precision=HI)
            + jnp.concatenate([raw["b_ih_f"] + raw["b_hh_f"],
                               raw["b_ih_b"] + raw["b_hh_b"]])[None, :])      # (1, 8H)

    # block-diagonal recurrent weights: [h_f | h_b] @ W -> [gates_f | gates_b]
    w_hh = jnp.zeros((2 * H, 8 * H), jnp.float32)
    w_hh = w_hh.at[:H, :4 * H].set(raw["w_hh_f"].T)
    w_hh = w_hh.at[H:, 4 * H:].set(raw["w_hh_b"].T)

    # block-diagonal reduce_h / reduce_c heads
    w_red = jnp.zeros((4 * H, 2 * H), jnp.float32)
    w_red = w_red.at[:2 * H, :H].set(raw["reduce_h_w"].T)
    w_red = w_red.at[2 * H:, H:].set(raw["reduce_c_w"].T)

    return {
        "hidden_dim": H, "k_eff": k_eff, "s_eff": s_eff,
        "w_in": w_in.astype(jnp.bfloat16),
        "b_in": b_in,
        "w_hh": w_hh.astype(jnp.bfloat16),
        "gamma": raw["ln_gamma"].reshape(1, 2 * H),
        "beta": raw["ln_beta"].reshape(1, 2 * H),
        "w_red": w_red.astype(jnp.bfloat16),
        "b_red": jnp.concatenate([raw["reduce_h_b"], raw["reduce_c_b"]]).reshape(1, 2 * H),
    }


# ----------------------------------------------------------------------------------
# Pure-JAX f32 reference mirroring the PyTorch forward (for validation)
# ----------------------------------------------------------------------------------
def reference_forward(raw, x, seq_lens, config):
    HI = jax.lax.Precision.HIGHEST
    H = config["hidden_dim"]
    k0, k1 = config["kernel_size"]
    s0, s1 = config["stride"]
    d0, d1 = config["dilation"]

    def conv1d(x_btc, w, b, stride, dil):
        K = w.shape[2]
        T_out = (x_btc.shape[1] - dil * (K - 1) - 1) // stride + 1
        y = jnp.zeros((x_btc.shape[0], T_out, w.shape[0]), jnp.float32) + b[None, None, :]
        for k in range(K):
            xs = x_btc[:, k * dil: k * dil + (T_out - 1) * stride + 1: stride, :]
            y = y + jnp.einsum("btc,oc->bto", xs, w[:, :, k], precision=HI)
        return y

    y1 = conv1d(x, raw["conv1_w"], raw["conv1_b"], s0, d0)
    y2 = conv1d(y1, raw["conv2_w"], raw["conv2_b"], s1, d1)

    r1 = (seq_lens - d0 * (k0 - 1) - 1) // s0 + 1
    lens = ((r1 - d1 * (k1 - 1) - 1) // s1 + 1).astype(jnp.int32)

    B, T, _ = y2.shape

    def cell(x_t, h, c, w_ih, w_hh, b_ih, b_hh):
        g = (jnp.dot(x_t, w_ih.T, precision=HI) + b_ih
             + jnp.dot(h, w_hh.T, precision=HI) + b_hh)
        i = 1.0 / (1.0 + jnp.exp(-g[:, :H]))
        f = 1.0 / (1.0 + jnp.exp(-g[:, H:2 * H]))
        gg = jnp.tanh(g[:, 2 * H:3 * H])
        o = 1.0 / (1.0 + jnp.exp(-g[:, 3 * H:]))
        c_new = f * c + i * gg
        return o * jnp.tanh(c_new), c_new

    h = jnp.zeros((B, H)); c = jnp.zeros((B, H)); outs_f = []
    for t in range(T):
        hn, cn = cell(y2[:, t], h, c, raw["w_ih_f"], raw["w_hh_f"], raw["b_ih_f"], raw["b_hh_f"])
        m = (t < lens).astype(jnp.float32)[:, None]
        h = m * hn + (1 - m) * h
        c = m * cn + (1 - m) * c
        outs_f.append(h * m)
    h_f, c_f = h, c

    h = jnp.zeros((B, H)); c = jnp.zeros((B, H)); outs_b = [None] * T
    for t in range(T - 1, -1, -1):
        hn, cn = cell(y2[:, t], h, c, raw["w_ih_b"], raw["w_hh_b"], raw["b_ih_b"], raw["b_hh_b"])
        m = (t < lens).astype(jnp.float32)[:, None]
        h = m * hn + (1 - m) * h
        c = m * cn + (1 - m) * c
        outs_b[t] = h * m
    h_b, c_b = h, c

    enc = jnp.concatenate([jnp.stack(outs_f, 1), jnp.stack(outs_b, 1)], axis=-1)
    mu = jnp.mean(enc, -1, keepdims=True)
    var = jnp.mean((enc - mu) ** 2, -1, keepdims=True)
    enc = (enc - mu) / jnp.sqrt(var + 1e-5) * raw["ln_gamma"] + raw["ln_beta"]

    h_cat = jnp.concatenate([h_f, h_b], axis=1)
    c_cat = jnp.concatenate([c_f, c_b], axis=1)
    h_red = jax.nn.relu(jnp.dot(h_cat, raw["reduce_h_w"].T, precision=HI) + raw["reduce_h_b"])
    c_red = jax.nn.relu(jnp.dot(c_cat, raw["reduce_c_w"].T, precision=HI) + raw["reduce_c_b"])

    mask = jnp.arange(T, dtype=jnp.int32)[None, :] < lens[:, None]
    return enc, (h_red, c_red), mask


if __name__ == "__main__":
    config = {
        "wav2vec2_emb_dim": 16,
        "num_channels": [32, 48],
        "kernel_size": [3, 3],
        "stride": [2, 2],
        "dilation": [1, 1],
        "hidden_dim": 32,
    }
    B, T_in = 2, 40

    key = jax.random.PRNGKey(0)
    k_par, k_x = jax.random.split(key)
    raw = init_raw_params(k_par, config)
    prep = prepare_params(raw, config)

    x = jax.random.normal(k_x, (B, T_in, config["wav2vec2_emb_dim"]), jnp.float32)
    seq_lens = jnp.array([T_in, 28], dtype=jnp.int32)

    fwd = jax.jit(lambda xx, ll: lstm_encoder_forward(prep, xx, ll, config))
    enc_k, (h_k, c_k), mask_k = fwd(x, seq_lens)
    enc_k, h_k, c_k, mask_k = jax.block_until_ready((enc_k, h_k, c_k, mask_k))

    enc_r, (h_r, c_r), mask_r = reference_forward(raw, x, seq_lens, config)

    # Tolerances reflect bf16 MXU operands in the kernels (the reference is all-f32);
    # LayerNorm divides by a small per-row std, which amplifies the bf16 rounding.
    checks = [("enc_out", enc_k, enc_r, 5e-2),
              ("h_reduced", h_k, h_r, 1e-2),
              ("c_reduced", c_k, c_r, 1e-2)]
    for name, a, b, tol in checks:
        assert np.allclose(np.asarray(a), np.asarray(b), atol=tol, rtol=tol), name
    assert np.array_equal(np.asarray(mask_k), np.asarray(mask_r)), "enc_mask"

    print("KERNEL_OK")
</pallas_src>

<mosaic_0001>
module attributes {stable_mosaic.version = 11 : i64} {
  func.func @bilstm_encoder_kernel(%arg0: i32, %arg1: memref<9x2x256xbf16, #tpu.memory_space<vmem>>, %arg2: memref<2x1xi32, #tpu.memory_space<vmem>>, %arg3: memref<64x256xbf16, #tpu.memory_space<vmem>>, %arg4: memref<1x64xf32, #tpu.memory_space<vmem>>, %arg5: memref<1x64xf32, #tpu.memory_space<vmem>>, %arg6: memref<128x64xbf16, #tpu.memory_space<vmem>>, %arg7: memref<1x64xf32, #tpu.memory_space<vmem>>, %arg8: memref<9x2x64xf32, #tpu.memory_space<vmem>>, %arg9: memref<2x64xf32, #tpu.memory_space<vmem>>) attributes {dimension_semantics = [#tpu.dimension_semantics<parallel>], iteration_bounds = array<i64: 1>, scalar_prefetch = 0 : i64, scratch_operands = 0 : i64, tpu.core_type = #tpu.core_type<tc>, window_params = [{transform_indices = @transform_0, window_bounds = array<i64: 9, 2, 256>}, {transform_indices = @transform_1, window_bounds = array<i64: 2, 1>}, {pipeline_mode = #tpu.pipeline_mode<synchronous>, transform_indices = @transform_2, window_bounds = array<i64: 64, 256>}, {pipeline_mode = #tpu.pipeline_mode<synchronous>, transform_indices = @transform_3, window_bounds = array<i64: 1, 64>}, {pipeline_mode = #tpu.pipeline_mode<synchronous>, transform_indices = @transform_4, window_bounds = array<i64: 1, 64>}, {pipeline_mode = #tpu.pipeline_mode<synchronous>, transform_indices = @transform_5, window_bounds = array<i64: 128, 64>}, {pipeline_mode = #tpu.pipeline_mode<synchronous>, transform_indices = @transform_6, window_bounds = array<i64: 1, 64>}, {transform_indices = @transform_7, window_bounds = array<i64: 9, 2, 64>}, {transform_indices = @transform_8, window_bounds = array<i64: 2, 64>}]} {
    %c0 = arith.constant 0 : index
    %c0_0 = arith.constant 0 : index
    %0 = vector.load %arg2[%c0, %c0_0] : memref<2x1xi32, #tpu.memory_space<vmem>>, vector<2x1xi32>
    %c0_1 = arith.constant 0 : index
    %c0_2 = arith.constant 0 : index
    %1 = vector.load %arg3[%c0_1, %c0_2] : memref<64x256xbf16, #tpu.memory_space<vmem>>, vector<64x256xbf16>
    %cst = arith.constant 0.000000e+00 : f32
    %2 = vector.broadcast %cst : f32 to vector<2x32xf32>
    %c0_i32 = arith.constant 0 : i32
    %c4_i32 = arith.constant 4 : i32
    %3 = arith.addi %c0_i32, %c4_i32 : i32
    %c1_i32 = arith.constant 1 : i32
    %4:4 = scf.for %arg10 = %c0_i32 to %3 step %c1_i32 iter_args(%arg11 = %2, %arg12 = %2, %arg13 = %2, %arg14 = %2) -> (vector<2x32xf32>, vector<2x32xf32>, vector<2x32xf32>, vector<2x32xf32>)  : i32 {
      %c2_i32 = arith.constant 2 : i32
      %119 = arith.muli %c2_i32, %arg10 : i32
      %c1_i32_45 = arith.constant 1 : i32
      %120 = arith.addi %119, %c1_i32_45 : i32
      %c2_i32_46 = arith.constant 2 : i32
      %121 = arith.muli %c2_i32_46, %arg10 : i32
      %c8_i32_47 = arith.constant 8 : i32
      %122 = arith.subi %c8_i32_47, %121 : i32
      %123 = tpu.concatenate %arg11, %arg13 in 1 : vector<2x32xf32>, vector<2x32xf32> -> vector<2x64xf32>
      %124 = arith.truncf %123 : vector<2x64xf32> to vector<2x64xbf16>
      %cst_48 = arith.constant dense<0.000000e+00> : vector<2x256xf32>
      %125 = tpu.matmul %124, %1, %cst_48 {dimension_numbers = #tpu.dot_dimension_numbers<[1], [0], [0], [1], [0, 0, 1, 1], [], []>} : vector<2x64xbf16>, vector<64x256xbf16>, vector<2x256xf32> -> vector<2x256xf32>
      %126 = vector.extract_strided_slice %125 {offsets = [0, 0], sizes = [2, 128], strides = [1, 1]} : vector<2x256xf32> to vector<2x128xf32>
      %127 = arith.index_cast %121 : i32 to index
      %c0_49 = arith.constant 0 : index
      %c0_50 = arith.constant 0 : index
      %128 = vector.load %arg1[%127, %c0_49, %c0_50] : memref<9x2x256xbf16, #tpu.memory_space<vmem>>, vector<1x2x256xbf16>
      %129 = vector.shape_cast %128 : vector<1x2x256xbf16> to vector<2x256xbf16>
      %130 = vector.extract_strided_slice %129 {offsets = [0, 0], sizes = [2, 128], strides = [1, 1]} : vector<2x256xbf16> to vector<2x128xbf16>
      %131 = arith.extf %130 : vector<2x128xbf16> to vector<2x128xf32>
      %132 = arith.addf %126, %131 : vector<2x128xf32>
      %133 = vector.extract_strided_slice %125 {offsets = [0, 128], sizes = [2, 128], strides = [1, 1]} : vector<2x256xf32> to vector<2x128xf32>
      %134 = arith.index_cast %122 : i32 to index
      %c0_51 = arith.constant 0 : index
      %c0_52 = arith.constant 0 : index
      %135 = vector.load %arg1[%134, %c0_51, %c0_52] : memref<9x2x256xbf16, #tpu.memory_space<vmem>>, vector<1x2x256xbf16>
      %136 = vector.shape_cast %135 : vector<1x2x256xbf16> to vector<2x256xbf16>
      %137 = vector.extract_strided_slice %136 {offsets = [0, 128], sizes = [2, 128], strides = [1, 1]} : vector<2x256xbf16> to vector<2x128xbf16>
      %138 = arith.extf %137 : vector<2x128xbf16> to vector<2x128xf32>
      %139 = arith.addf %133, %138 : vector<2x128xf32>
      %140 = vector.extract_strided_slice %132 {offsets = [0, 0], sizes = [2, 32], strides = [1, 1]} : vector<2x128xf32> to vector<2x32xf32>
      %cst_53 = arith.constant 0.000000e+00 : f32
      %141 = vector.broadcast %cst_53 : f32 to vector<2x32xf32>
      %142 = arith.subf %141, %140 : vector<2x32xf32>
      %143 = math.exp %142 : vector<2x32xf32>
      %cst_54 = arith.constant 1.000000e+00 : f32
      %144 = vector.broadcast %cst_54 : f32 to vector<2x32xf32>
      %145 = arith.addf %144, %143 : vector<2x32xf32>
      %146 = tpu.reciprocal %145 {approx = true} : vector<2x32xf32> -> vector<2x32xf32>
      %147 = vector.extract_strided_slice %132 {offsets = [0, 32], sizes = [2, 32], strides = [1, 1]} : vector<2x128xf32> to vector<2x32xf32>
      %cst_55 = arith.constant 0.000000e+00 : f32
      %148 = vector.broadcast %cst_55 : f32 to vector<2x32xf32>
      %149 = arith.subf %148, %147 : vector<2x32xf32>
      %150 = math.exp %149 : vector<2x32xf32>
      %cst_56 = arith.constant 1.000000e+00 : f32
      %151 = vector.broadcast %cst_56 : f32 to vector<2x32xf32>
      %152 = arith.addf %151, %150 : vector<2x32xf32>
      %153 = tpu.reciprocal %152 {approx = true} : vector<2x32xf32> -> vector<2x32xf32>
      %154 = vector.extract_strided_slice %132 {offsets = [0, 64], sizes = [2, 32], strides = [1, 1]} : vector<2x128xf32> to vector<2x32xf32>
      %155 = math.tanh %154 : vector<2x32xf32>
      %156 = vector.extract_strided_slice %132 {offsets = [0, 96], sizes = [2, 32], strides = [1, 1]} : vector<2x128xf32> to vector<2x32xf32>
      %cst_57 = arith.constant 0.000000e+00 : f32
      %157 = vector.broadcast %cst_57 : f32 to vector<2x32xf32>
      %158 = arith.subf %157, %156 : vector<2x32xf32>
      %159 = math.exp %158 : vector<2x32xf32>
      %cst_58 = arith.constant 1.000000e+00 : f32
      %160 = vector.broadcast %cst_58 : f32 to vector<2x32xf32>
      %161 = arith.addf %160, %159 : vector<2x32xf32>
      %162 = tpu.reciprocal %161 {approx = true} : vector<2x32xf32> -> vector<2x32xf32>
      %163 = arith.mulf %153, %arg12 : vector<2x32xf32>
      %164 = arith.mulf %146, %155 : vector<2x32xf32>
      %165 = arith.addf %163, %164 : vector<2x32xf32>
      %166 = math.tanh %165 : vector<2x32xf32>
      %167 = arith.mulf %162, %166 : vector<2x32xf32>
      %168 = vector.extract_strided_slice %139 {offsets = [0, 0], sizes = [2, 32], strides = [1, 1]} : vector<2x128xf32> to vector<2x32xf32>
      %cst_59 = arith.constant 0.000000e+00 : f32
      %169 = vector.broadcast %cst_59 : f32 to vector<2x32xf32>
      %170 = arith.subf %169, %168 : vector<2x32xf32>
      %171 = math.exp %170 : vector<2x32xf32>
      %cst_60 = arith.constant 1.000000e+00 : f32
      %172 = vector.broadcast %cst_60 : f32 to vector<2x32xf32>
      %173 = arith.addf %172, %171 : vector<2x32xf32>
      %174 = tpu.reciprocal %173 {approx = true} : vector<2x32xf32> -> vector<2x32xf32>
      %175 = vector.extract_strided_slice %139 {offsets = [0, 32], sizes = [2, 32], strides = [1, 1]} : vector<2x128xf32> to vector<2x32xf32>
      %cst_61 = arith.constant 0.000000e+00 : f32
      %176 = vector.broadcast %cst_61 : f32 to vector<2x32xf32>
      %177 = arith.subf %176, %175 : vector<2x32xf32>
      %178 = math.exp %177 : vector<2x32xf32>
      %cst_62 = arith.constant 1.000000e+00 : f32
      %179 = vector.broadcast %cst_62 : f32 to vector<2x32xf32>
      %180 = arith.addf %179, %178 : vector<2x32xf32>
      %181 = tpu.reciprocal %180 {approx = true} : vector<2x32xf32> -> vector<2x32xf32>
      %182 = vector.extract_strided_slice %139 {offsets = [0, 64], sizes = [2, 32], strides = [1, 1]} : vector<2x128xf32> to vector<2x32xf32>
      %183 = math.tanh %182 : vector<2x32xf32>
      %184 = vector.extract_strided_slice %139 {offsets = [0, 96], sizes = [2, 32], strides = [1, 1]} : vector<2x128xf32> to vector<2x32xf32>
      %cst_63 = arith.constant 0.000000e+00 : f32
      %185 = vector.broadcast %cst_63 : f32 to vector<2x32xf32>
      %186 = arith.subf %185, %184 : vector<2x32xf32>
      %187 = math.exp %186 : vector<2x32xf32>
      %cst_64 = arith.constant 1.000000e+00 : f32
      %188 = vector.broadcast %cst_64 : f32 to vector<2x32xf32>
      %189 = arith.addf %188, %187 : vector<2x32xf32>
      %190 = tpu.reciprocal %189 {approx = true} : vector<2x32xf32> -> vector<2x32xf32>
      %191 = arith.mulf %181, %arg14 : vector<2x32xf32>
      %192 = arith.mulf %174, %183 : vector<2x32xf32>
      %193 = arith.addf %191, %192 : vector<2x32xf32>
      %194 = math.tanh %193 : vector<2x32xf32>
      %195 = arith.mulf %190, %194 : vector<2x32xf32>
      %196 = vector.broadcast %121 : i32 to vector<2x1xi32>
      %197 = arith.cmpi slt, %196, %0 : vector<2x1xi32>
      %198 = vector.broadcast %122 : i32 to vector<2x1xi32>
      %199 = arith.cmpi slt, %198, %0 : vector<2x1xi32>
      %200 = vector.shape_cast %197 : vector<2x1xi1> to vector<2x1xi1>
      %201 = vector.broadcast %200 : vector<2x1xi1> to vector<2x32xi1>
      %202 = arith.select %201, %167, %arg11 : vector<2x32xi1>, vector<2x32xf32>
      %203 = vector.shape_cast %197 : vector<2x1xi1> to vector<2x1xi1>
      %204 = vector.broadcast %203 : vector<2x1xi1> to vector<2x32xi1>
      %205 = arith.select %204, %165, %arg12 : vector<2x32xi1>, vector<2x32xf32>
      %206 = vector.shape_cast %199 : vector<2x1xi1> to vector<2x1xi1>
      %207 = vector.broadcast %206 : vector<2x1xi1> to vector<2x32xi1>
      %208 = arith.select %207, %195, %arg13 : vector<2x32xi1>, vector<2x32xf32>
      %209 = vector.shape_cast %199 : vector<2x1xi1> to vector<2x1xi1>
      %210 = vector.broadcast %209 : vector<2x1xi1> to vector<2x32xi1>
      %211 = arith.select %210, %193, %arg14 : vector<2x32xi1>, vector<2x32xf32>
      %cst_65 = arith.constant 0.000000e+00 : f32
      %212 = vector.shape_cast %197 : vector<2x1xi1> to vector<2x1xi1>
      %213 = vector.broadcast %212 : vector<2x1xi1> to vector<2x32xi1>
      %214 = vector.broadcast %cst_65 : f32 to vector<2x32xf32>
      %215 = arith.select %213, %167, %214 : vector<2x32xi1>, vector<2x32xf32>
      %216 = arith.index_cast %121 : i32 to index
      %c0_66 = arith.constant 0 : index
      %c0_67 = arith.constant 0 : index
      %217 = vector.load %arg8[%216, %c0_66, %c0_67] : memref<9x2x64xf32, #tpu.memory_space<vmem>>, vector<1x2x32xf32>
      %218 = vector.shape_cast %217 : vector<1x2x32xf32> to vector<2x32xf32>
      %219 = vector.shape_cast %215 : vector<2x32xf32> to vector<1x2x32xf32>
      tpu.vector_store %arg8[%216, %c0_66, %c0_67], %219 {strides = array<i32>} : memref<9x2x64xf32, #tpu.memory_space<vmem>>, vector<1x2x32xf32>,
      %cst_68 = arith.constant 0.000000e+00 : f32
      %220 = vector.shape_cast %199 : vector<2x1xi1> to vector<2x1xi1>
      %221 = vector.broadcast %220 : vector<2x1xi1> to vector<2x32xi1>
      %222 = vector.broadcast %cst_68 : f32 to vector<2x32xf32>
      %223 = arith.select %221, %195, %222 : vector<2x32xi1>, vector<2x32xf32>
      %224 = arith.index_cast %122 : i32 to index
      %c0_69 = arith.constant 0 : index
      %c32_70 = arith.constant 32 : index
      %225 = vector.load %arg8[%224, %c0_69, %c32_70] : memref<9x2x64xf32, #tpu.memory_space<vmem>>, vector<1x2x32xf32>
      %226 = vector.shape_cast %225 : vector<1x2x32xf32> to vector<2x32xf32>
      %227 = vector.shape_cast %223 : vector<2x32xf32> to vector<1x2x32xf32>
      tpu.vector_store %arg8[%224, %c0_69, %c32_70], %227 {strides = array<i32>} : memref<9x2x64xf32, #tpu.memory_space<vmem>>, vector<1x2x32xf32>,
      %c8_i32_71 = arith.constant 8 : i32
      %228 = arith.subi %c8_i32_71, %120 : i32
      %229 = tpu.concatenate %202, %208 in 1 : vector<2x32xf32>, vector<2x32xf32> -> vector<2x64xf32>
      %230 = arith.truncf %229 : vector<2x64xf32> to vector<2x64xbf16>
      %cst_72 = arith.constant dense<0.000000e+00> : vector<2x256xf32>
      %231 = tpu.matmul %230, %1, %cst_72 {dimension_numbers = #tpu.dot_dimension_numbers<[1], [0], [0], [1], [0, 0, 1, 1], [], []>} : vector<2x64xbf16>, vector<64x256xbf16>, vector<2x256xf32> -> vector<2x256xf32>
      %232 = vector.extract_strided_slice %231 {offsets = [0, 0], sizes = [2, 128], strides = [1, 1]} : vector<2x256xf32> to vector<2x128xf32>
      %233 = arith.index_cast %120 : i32 to index
      %c0_73 = arith.constant 0 : index
      %c0_74 = arith.constant 0 : index
      %234 = vector.load %arg1[%233, %c0_73, %c0_74] : memref<9x2x256xbf16, #tpu.memory_space<vmem>>, vector<1x2x256xbf16>
      %235 = vector.shape_cast %234 : vector<1x2x256xbf16> to vector<2x256xbf16>
      %236 = vector.extract_strided_slice %235 {offsets = [0, 0], sizes = [2, 128], strides = [1, 1]} : vector<2x256xbf16> to vector<2x128xbf16>
      %237 = arith.extf %236 : vector<2x128xbf16> to vector<2x128xf32>
      %238 = arith.addf %232, %237 : vector<2x128xf32>
      %239 = vector.extract_strided_slice %231 {offsets = [0, 128], sizes = [2, 128], strides = [1, 1]} : vector<2x256xf32> to vector<2x128xf32>
      %240 = arith.index_cast %228 : i32 to index
      %c0_75 = arith.constant 0 : index
      %c0_76 = arith.constant 0 : index
      %241 = vector.load %arg1[%240, %c0_75, %c0_76] : memref<9x2x256xbf16, #tpu.memory_space<vmem>>, vector<1x2x256xbf16>
      %242 = vector.shape_cast %241 : vector<1x2x256xbf16> to vector<2x256xbf16>
      %243 = vector.extract_strided_slice %242 {offsets = [0, 128], sizes = [2, 128], strides = [1, 1]} : vector<2x256xbf16> to vector<2x128xbf16>
      %244 = arith.extf %243 : vector<2x128xbf16> to vector<2x128xf32>
      %245 = arith.addf %239, %244 : vector<2x128xf32>
      %246 = vector.extract_strided_slice %238 {offsets = [0, 0], sizes = [2, 32], strides = [1, 1]} : vector<2x128xf32> to vector<2x32xf32>
      %cst_77 = arith.constant 0.000000e+00 : f32
      %247 = vector.broadcast %cst_77 : f32 to vector<2x32xf32>
      %248 = arith.subf %247, %246 : vector<2x32xf32>
      %249 = math.exp %248 : vector<2x32xf32>
      %cst_78 = arith.constant 1.000000e+00 : f32
      %250 = vector.broadcast %cst_78 : f32 to vector<2x32xf32>
      %251 = arith.addf %250, %249 : vector<2x32xf32>
      %252 = tpu.reciprocal %251 {approx = true} : vector<2x32xf32> -> vector<2x32xf32>
      %253 = vector.extract_strided_slice %238 {offsets = [0, 32], sizes = [2, 32], strides = [1, 1]} : vector<2x128xf32> to vector<2x32xf32>
      %cst_79 = arith.constant 0.000000e+00 : f32
      %254 = vector.broadcast %cst_79 : f32 to vector<2x32xf32>
      %255 = arith.subf %254, %253 : vector<2x32xf32>
      %256 = math.exp %255 : vector<2x32xf32>
      %cst_80 = arith.constant 1.000000e+00 : f32
      %257 = vector.broadcast %cst_80 : f32 to vector<2x32xf32>
      %258 = arith.addf %257, %256 : vector<2x32xf32>
      %259 = tpu.reciprocal %258 {approx = true} : vector<2x32xf32> -> vector<2x32xf32>
      %260 = vector.extract_strided_slice %238 {offsets = [0, 64], sizes = [2, 32], strides = [1, 1]} : vector<2x128xf32> to vector<2x32xf32>
      %261 = math.tanh %260 : vector<2x32xf32>
      %262 = vector.extract_strided_slice %238 {offsets = [0, 96], sizes = [2, 32], strides = [1, 1]} : vector<2x128xf32> to vector<2x32xf32>
      %cst_81 = arith.constant 0.000000e+00 : f32
      %263 = vector.broadcast %cst_81 : f32 to vector<2x32xf32>
      %264 = arith.subf %263, %262 : vector<2x32xf32>
      %265 = math.exp %264 : vector<2x32xf32>
      %cst_82 = arith.constant 1.000000e+00 : f32
      %266 = vector.broadcast %cst_82 : f32 to vector<2x32xf32>
      %267 = arith.addf %266, %265 : vector<2x32xf32>
      %268 = tpu.reciprocal %267 {approx = true} : vector<2x32xf32> -> vector<2x32xf32>
      %269 = arith.mulf %259, %205 : vector<2x32xf32>
      %270 = arith.mulf %252, %261 : vector<2x32xf32>
      %271 = arith.addf %269, %270 : vector<2x32xf32>
      %272 = math.tanh %271 : vector<2x32xf32>
      %273 = arith.mulf %268, %272 : vector<2x32xf32>
      %274 = vector.extract_strided_slice %245 {offsets = [0, 0], sizes = [2, 32], strides = [1, 1]} : vector<2x128xf32> to vector<2x32xf32>
      %cst_83 = arith.constant 0.000000e+00 : f32
      %275 = vector.broadcast %cst_83 : f32 to vector<2x32xf32>
      %276 = arith.subf %275, %274 : vector<2x32xf32>
      %277 = math.exp %276 : vector<2x32xf32>
      %cst_84 = arith.constant 1.000000e+00 : f32
      %278 = vector.broadcast %cst_84 : f32 to vector<2x32xf32>
      %279 = arith.addf %278, %277 : vector<2x32xf32>
      %280 = tpu.reciprocal %279 {approx = true} : vector<2x32xf32> -> vector<2x32xf32>
      %281 = vector.extract_strided_slice %245 {offsets = [0, 32], sizes = [2, 32], strides = [1, 1]} : vector<2x128xf32> to vector<2x32xf32>
      %cst_85 = arith.constant 0.000000e+00 : f32
      %282 = vector.broadcast %cst_85 : f32 to vector<2x32xf32>
      %283 = arith.subf %282, %281 : vector<2x32xf32>
      %284 = math.exp %283 : vector<2x32xf32>
      %cst_86 = arith.constant 1.000000e+00 : f32
      %285 = vector.broadcast %cst_86 : f32 to vector<2x32xf32>
      %286 = arith.addf %285, %284 : vector<2x32xf32>
      %287 = tpu.reciprocal %286 {approx = true} : vector<2x32xf32> -> vector<2x32xf32>
      %288 = vector.extract_strided_slice %245 {offsets = [0, 64], sizes = [2, 32], strides = [1, 1]} : vector<2x128xf32> to vector<2x32xf32>
      %289 = math.tanh %288 : vector<2x32xf32>
      %290 = vector.extract_strided_slice %245 {offsets = [0, 96], sizes = [2, 32], strides = [1, 1]} : vector<2x128xf32> to vector<2x32xf32>
      %cst_87 = arith.constant 0.000000e+00 : f32
      %291 = vector.broadcast %cst_87 : f32 to vector<2x32xf32>
      %292 = arith.subf %291, %290 : vector<2x32xf32>
      %293 = math.exp %292 : vector<2x32xf32>
      %cst_88 = arith.constant 1.000000e+00 : f32
      %294 = vector.broadcast %cst_88 : f32 to vector<2x32xf32>
      %295 = arith.addf %294, %293 : vector<2x32xf32>
      %296 = tpu.reciprocal %295 {approx = true} : vector<2x32xf32> -> vector<2x32xf32>
      %297 = arith.mulf %287, %211 : vector<2x32xf32>
      %298 = arith.mulf %280, %289 : vector<2x32xf32>
      %299 = arith.addf %297, %298 : vector<2x32xf32>
      %300 = math.tanh %299 : vector<2x32xf32>
      %301 = arith.mulf %296, %300 : vector<2x32xf32>
      %302 = vector.broadcast %120 : i32 to vector<2x1xi32>
      %303 = arith.cmpi slt, %302, %0 : vector<2x1xi32>
      %304 = vector.broadcast %228 : i32 to vector<2x1xi32>
      %305 = arith.cmpi slt, %304, %0 : vector<2x1xi32>
      %306 = vector.shape_cast %303 : vector<2x1xi1> to vector<2x1xi1>
      %307 = vector.broadcast %306 : vector<2x1xi1> to vector<2x32xi1>
      %308 = arith.select %307, %273, %202 : vector<2x32xi1>, vector<2x32xf32>
      %309 = vector.shape_cast %303 : vector<2x1xi1> to vector<2x1xi1>
      %310 = vector.broadcast %309 : vector<2x1xi1> to vector<2x32xi1>
      %311 = arith.select %310, %271, %205 : vector<2x32xi1>, vector<2x32xf32>
      %312 = vector.shape_cast %305 : vector<2x1xi1> to vector<2x1xi1>
      %313 = vector.broadcast %312 : vector<2x1xi1> to vector<2x32xi1>
      %314 = arith.select %313, %301, %208 : vector<2x32xi1>, vector<2x32xf32>
      %315 = vector.shape_cast %305 : vector<2x1xi1> to vector<2x1xi1>
      %316 = vector.broadcast %315 : vector<2x1xi1> to vector<2x32xi1>
      %317 = arith.select %316, %299, %211 : vector<2x32xi1>, vector<2x32xf32>
      %cst_89 = arith.constant 0.000000e+00 : f32
      %318 = vector.shape_cast %303 : vector<2x1xi1> to vector<2x1xi1>
      %319 = vector.broadcast %318 : vector<2x1xi1> to vector<2x32xi1>
      %320 = vector.broadcast %cst_89 : f32 to vector<2x32xf32>
      %321 = arith.select %319, %273, %320 : vector<2x32xi1>, vector<2x32xf32>
      %322 = arith.index_cast %120 : i32 to index
      %c0_90 = arith.constant 0 : index
      %c0_91 = arith.constant 0 : index
      %323 = vector.load %arg8[%322, %c0_90, %c0_91] : memref<9x2x64xf32, #tpu.memory_space<vmem>>, vector<1x2x32xf32>
      %324 = vector.shape_cast %323 : vector<1x2x32xf32> to vector<2x32xf32>
      %325 = vector.shape_cast %321 : vector<2x32xf32> to vector<1x2x32xf32>
      tpu.vector_store %arg8[%322, %c0_90, %c0_91], %325 {strides = array<i32>} : memref<9x2x64xf32, #tpu.memory_space<vmem>>, vector<1x2x32xf32>,
      %cst_92 = arith.constant 0.000000e+00 : f32
      %326 = vector.shape_cast %305 : vector<2x1xi1> to vector<2x1xi1>
      %327 = vector.broadcast %326 : vector<2x1xi1> to vector<2x32xi1>
      %328 = vector.broadcast %cst_92 : f32 to vector<2x32xf32>
      %329 = arith.select %327, %301, %328 : vector<2x32xi1>, vector<2x32xf32>
      %330 = arith.index_cast %228 : i32 to index
      %c0_93 = arith.constant 0 : index
      %c32_94 = arith.constant 32 : index
      %331 = vector.load %arg8[%330, %c0_93, %c32_94] : memref<9x2x64xf32, #tpu.memory_space<vmem>>, vector<1x2x32xf32>
      %332 = vector.shape_cast %331 : vector<1x2x32xf32> to vector<2x32xf32>
      %333 = vector.shape_cast %329 : vector<2x32xf32> to vector<1x2x32xf32>
      tpu.vector_store %arg8[%330, %c0_93, %c32_94], %333 {strides = array<i32>} : memref<9x2x64xf32, #tpu.memory_space<vmem>>, vector<1x2x32xf32>,
      scf.yield %308, %311, %314, %317 : vector<2x32xf32>, vector<2x32xf32>, vector<2x32xf32>, vector<2x32xf32>
    }
    %c4_i32_3 = arith.constant 4 : i32
    %5 = tpu.concatenate %4#0, %4#2 in 1 : vector<2x32xf32>, vector<2x32xf32> -> vector<2x64xf32>
    %6 = arith.truncf %5 : vector<2x64xf32> to vector<2x64xbf16>
    %cst_4 = arith.constant dense<0.000000e+00> : vector<2x256xf32>
    %7 = tpu.matmul %6, %1, %cst_4 {dimension_numbers = #tpu.dot_dimension_numbers<[1], [0], [0], [1], [0, 0, 1, 1], [], []>} : vector<2x64xbf16>, vector<64x256xbf16>, vector<2x256xf32> -> vector<2x256xf32>
    %8 = vector.extract_strided_slice %7 {offsets = [0, 0], sizes = [2, 128], strides = [1, 1]} : vector<2x256xf32> to vector<2x128xf32>
    %c8 = arith.constant 8 : index
    %c0_5 = arith.constant 0 : index
    %c0_6 = arith.constant 0 : index
    %9 = vector.load %arg1[%c8, %c0_5, %c0_6] : memref<9x2x256xbf16, #tpu.memory_space<vmem>>, vector<1x2x256xbf16>
    %10 = vector.shape_cast %9 : vector<1x2x256xbf16> to vector<2x256xbf16>
    %11 = vector.extract_strided_slice %10 {offsets = [0, 0], sizes = [2, 128], strides = [1, 1]} : vector<2x256xbf16> to vector<2x128xbf16>
    %12 = arith.extf %11 : vector<2x128xbf16> to vector<2x128xf32>
    %13 = arith.addf %8, %12 : vector<2x128xf32>
    %14 = vector.extract_strided_slice %7 {offsets = [0, 128], sizes = [2, 128], strides = [1, 1]} : vector<2x256xf32> to vector<2x128xf32>
    %c0_7 = arith.constant 0 : index
    %c0_8 = arith.constant 0 : index
    %c0_9 = arith.constant 0 : index
    %15 = vector.load %arg1[%c0_7, %c0_8, %c0_9] : memref<9x2x256xbf16, #tpu.memory_space<vmem>>, vector<1x2x256xbf16>
    %16 = vector.shape_cast %15 : vector<1x2x256xbf16> to vector<2x256xbf16>
    %17 = vector.extract_strided_slice %16 {offsets = [0, 128], sizes = [2, 128], strides = [1, 1]} : vector<2x256xbf16> to vector<2x128xbf16>
    %18 = arith.extf %17 : vector<2x128xbf16> to vector<2x128xf32>
    %19 = arith.addf %14, %18 : vector<2x128xf32>
    %20 = vector.extract_strided_slice %13 {offsets = [0, 0], sizes = [2, 32], strides = [1, 1]} : vector<2x128xf32> to vector<2x32xf32>
    %cst_10 = arith.constant 0.000000e+00 : f32
    %21 = vector.broadcast %cst_10 : f32 to vector<2x32xf32>
    %22 = arith.subf %21, %20 : vector<2x32xf32>
    %23 = math.exp %22 : vector<2x32xf32>
    %cst_11 = arith.constant 1.000000e+00 : f32
    %24 = vector.broadcast %cst_11 : f32 to vector<2x32xf32>
    %25 = arith.addf %24, %23 : vector<2x32xf32>
    %26 = tpu.reciprocal %25 {approx = true} : vector<2x32xf32> -> vector<2x32xf32>
    %27 = vector.extract_strided_slice %13 {offsets = [0, 32], sizes = [2, 32], strides = [1, 1]} : vector<2x128xf32> to vector<2x32xf32>
    %cst_12 = arith.constant 0.000000e+00 : f32
    %28 = vector.broadcast %cst_12 : f32 to vector<2x32xf32>
    %29 = arith.subf %28, %27 : vector<2x32xf32>
    %30 = math.exp %29 : vector<2x32xf32>
    %cst_13 = arith.constant 1.000000e+00 : f32
    %31 = vector.broadcast %cst_13 : f32 to vector<2x32xf32>
    %32 = arith.addf %31, %30 : vector<2x32xf32>
    %33 = tpu.reciprocal %32 {approx = true} : vector<2x32xf32> -> vector<2x32xf32>
    %34 = vector.extract_strided_slice %13 {offsets = [0, 64], sizes = [2, 32], strides = [1, 1]} : vector<2x128xf32> to vector<2x32xf32>
    %35 = math.tanh %34 : vector<2x32xf32>
    %36 = vector.extract_strided_slice %13 {offsets = [0, 96], sizes = [2, 32], strides = [1, 1]} : vector<2x128xf32> to vector<2x32xf32>
    %cst_14 = arith.constant 0.000000e+00 : f32
    %37 = vector.broadcast %cst_14 : f32 to vector<2x32xf32>
    %38 = arith.subf %37, %36 : vector<2x32xf32>
    %39 = math.exp %38 : vector<2x32xf32>
    %cst_15 = arith.constant 1.000000e+00 : f32
    %40 = vector.broadcast %cst_15 : f32 to vector<2x32xf32>
    %41 = arith.addf %40, %39 : vector<2x32xf32>
    %42 = tpu.reciprocal %41 {approx = true} : vector<2x32xf32> -> vector<2x32xf32>
    %43 = arith.mulf %33, %4#1 : vector<2x32xf32>
    %44 = arith.mulf %26, %35 : vector<2x32xf32>
    %45 = arith.addf %43, %44 : vector<2x32xf32>
    %46 = math.tanh %45 : vector<2x32xf32>
    %47 = arith.mulf %42, %46 : vector<2x32xf32>
    %48 = vector.extract_strided_slice %19 {offsets = [0, 0], sizes = [2, 32], strides = [1, 1]} : vector<2x128xf32> to vector<2x32xf32>
    %cst_16 = arith.constant 0.000000e+00 : f32
    %49 = vector.broadcast %cst_16 : f32 to vector<2x32xf32>
    %50 = arith.subf %49, %48 : vector<2x32xf32>
    %51 = math.exp %50 : vector<2x32xf32>
    %cst_17 = arith.constant 1.000000e+00 : f32
    %52 = vector.broadcast %cst_17 : f32 to vector<2x32xf32>
    %53 = arith.addf %52, %51 : vector<2x32xf32>
    %54 = tpu.reciprocal %53 {approx = true} : vector<2x32xf32> -> vector<2x32xf32>
    %55 = vector.extract_strided_slice %19 {offsets = [0, 32], sizes = [2, 32], strides = [1, 1]} : vector<2x128xf32> to vector<2x32xf32>
    %cst_18 = arith.constant 0.000000e+00 : f32
    %56 = vector.broadcast %cst_18 : f32 to vector<2x32xf32>
    %57 = arith.subf %56, %55 : vector<2x32xf32>
    %58 = math.exp %57 : vector<2x32xf32>
    %cst_19 = arith.constant 1.000000e+00 : f32
    %59 = vector.broadcast %cst_19 : f32 to vector<2x32xf32>
    %60 = arith.addf %59, %58 : vector<2x32xf32>
    %61 = tpu.reciprocal %60 {approx = true} : vector<2x32xf32> -> vector<2x32xf32>
    %62 = vector.extract_strided_slice %19 {offsets = [0, 64], sizes = [2, 32], strides = [1, 1]} : vector<2x128xf32> to vector<2x32xf32>
    %63 = math.tanh %62 : vector<2x32xf32>
    %64 = vector.extract_strided_slice %19 {offsets = [0, 96], sizes = [2, 32], strides = [1, 1]} : vector<2x128xf32> to vector<2x32xf32>
    %cst_20 = arith.constant 0.000000e+00 : f32
    %65 = vector.broadcast %cst_20 : f32 to vector<2x32xf32>
    %66 = arith.subf %65, %64 : vector<2x32xf32>
    %67 = math.exp %66 : vector<2x32xf32>
    %cst_21 = arith.constant 1.000000e+00 : f32
    %68 = vector.broadcast %cst_21 : f32 to vector<2x32xf32>
    %69 = arith.addf %68, %67 : vector<2x32xf32>
    %70 = tpu.reciprocal %69 {approx = true} : vector<2x32xf32> -> vector<2x32xf32>
    %71 = arith.mulf %61, %4#3 : vector<2x32xf32>
    %72 = arith.mulf %54, %63 : vector<2x32xf32>
    %73 = arith.addf %71, %72 : vector<2x32xf32>
    %74 = math.tanh %73 : vector<2x32xf32>
    %75 = arith.mulf %70, %74 : vector<2x32xf32>
    %c8_i32 = arith.constant 8 : i32
    %76 = vector.broadcast %c8_i32 : i32 to vector<2x1xi32>
    %77 = arith.cmpi sgt, %0, %76 : vector<2x1xi32>
    %c0_i32_22 = arith.constant 0 : i32
    %78 = vector.broadcast %c0_i32_22 : i32 to vector<2x1xi32>
    %79 = arith.cmpi sgt, %0, %78 : vector<2x1xi32>
    %80 = vector.shape_cast %77 : vector<2x1xi1> to vector<2x1xi1>
    %81 = vector.broadcast %80 : vector<2x1xi1> to vector<2x32xi1>
    %82 = arith.select %81, %47, %4#0 : vector<2x32xi1>, vector<2x32xf32>
    %83 = vector.shape_cast %77 : vector<2x1xi1> to vector<2x1xi1>
    %84 = vector.broadcast %83 : vector<2x1xi1> to vector<2x32xi1>
    %85 = arith.select %84, %45, %4#1 : vector<2x32xi1>, vector<2x32xf32>
    %86 = vector.shape_cast %79 : vector<2x1xi1> to vector<2x1xi1>
    %87 = vector.broadcast %86 : vector<2x1xi1> to vector<2x32xi1>
    %88 = arith.select %87, %75, %4#2 : vector<2x32xi1>, vector<2x32xf32>
    %89 = vector.shape_cast %79 : vector<2x1xi1> to vector<2x1xi1>
    %90 = vector.broadcast %89 : vector<2x1xi1> to vector<2x32xi1>
    %91 = arith.select %90, %73, %4#3 : vector<2x32xi1>, vector<2x32xf32>
    %cst_23 = arith.constant 0.000000e+00 : f32
    %92 = vector.shape_cast %77 : vector<2x1xi1> to vector<2x1xi1>
    %93 = vector.broadcast %92 : vector<2x1xi1> to vector<2x32xi1>
    %94 = vector.broadcast %cst_23 : f32 to vector<2x32xf32>
    %95 = arith.select %93, %47, %94 : vector<2x32xi1>, vector<2x32xf32>
    %c8_24 = arith.constant 8 : index
    %c0_25 = arith.constant 0 : index
    %c0_26 = arith.constant 0 : index
    %96 = vector.load %arg8[%c8_24, %c0_25, %c0_26] : memref<9x2x64xf32, #tpu.memory_space<vmem>>, vector<1x2x32xf32>
    %97 = vector.shape_cast %96 : vector<1x2x32xf32> to vector<2x32xf32>
    %98 = vector.shape_cast %95 : vector<2x32xf32> to vector<1x2x32xf32>
    tpu.vector_store %arg8[%c8_24, %c0_25, %c0_26], %98 {strides = array<i32>} : memref<9x2x64xf32, #tpu.memory_space<vmem>>, vector<1x2x32xf32>,
    %cst_27 = arith.constant 0.000000e+00 : f32
    %99 = vector.shape_cast %79 : vector<2x1xi1> to vector<2x1xi1>
    %100 = vector.broadcast %99 : vector<2x1xi1> to vector<2x32xi1>
    %101 = vector.broadcast %cst_27 : f32 to vector<2x32xf32>
    %102 = arith.select %100, %75, %101 : vector<2x32xi1>, vector<2x32xf32>
    %c0_28 = arith.constant 0 : index
    %c0_29 = arith.constant 0 : index
    %c32 = arith.constant 32 : index
    %103 = vector.load %arg8[%c0_28, %c0_29, %c32] : memref<9x2x64xf32, #tpu.memory_space<vmem>>, vector<1x2x32xf32>
    %104 = vector.shape_cast %103 : vector<1x2x32xf32> to vector<2x32xf32>
    %105 = vector.shape_cast %102 : vector<2x32xf32> to vector<1x2x32xf32>
    tpu.vector_store %arg8[%c0_28, %c0_29, %c32], %105 {strides = array<i32>} : memref<9x2x64xf32, #tpu.memory_space<vmem>>, vector<1x2x32xf32>,
    %c0_30 = arith.constant 0 : index
    %c0_31 = arith.constant 0 : index
    %106 = vector.load %arg4[%c0_30, %c0_31] : memref<1x64xf32, #tpu.memory_space<vmem>>, vector<1x64xf32>
    %c0_32 = arith.constant 0 : index
    %c0_33 = arith.constant 0 : index
    %107 = vector.load %arg5[%c0_32, %c0_33] : memref<1x64xf32, #tpu.memory_space<vmem>>, vector<1x64xf32>
    %c0_i32_34 = arith.constant 0 : i32
    %c9_i32 = arith.constant 9 : i32
    %108 = arith.addi %c0_i32_34, %c9_i32 : i32
    %c1_i32_35 = arith.constant 1 : i32
    scf.for %arg10 = %c0_i32_34 to %108 step %c1_i32_35  : i32 {
      %119 = arith.index_cast %arg10 : i32 to index
      %c0_45 = arith.constant 0 : index
      %c0_46 = arith.constant 0 : index
      %120 = vector.load %arg8[%119, %c0_45, %c0_46] : memref<9x2x64xf32, #tpu.memory_space<vmem>>, vector<1x2x64xf32>
      %121 = vector.shape_cast %120 : vector<1x2x64xf32> to vector<2x64xf32>
      %cst_47 = arith.constant dense<0.000000e+00> : vector<2xf32>
      %122 = vector.multi_reduction <add>, %121, %cst_47 [1] : vector<2x64xf32> to vector<2xf32>
      %123 = vector.shape_cast %122 : vector<2xf32> to vector<2x1xf32>
      %cst_48 = arith.constant 6.400000e+01 : f32
      %124 = vector.broadcast %cst_48 : f32 to vector<2x1xf32>
      %125 = arith.divf %123, %124 : vector<2x1xf32>
      %126 = vector.broadcast %125 : vector<2x1xf32> to vector<2x64xf32>
      %127 = arith.subf %121, %126 : vector<2x64xf32>
      %128 = arith.mulf %127, %127 : vector<2x64xf32>
      %cst_49 = arith.constant dense<0.000000e+00> : vector<2xf32>
      %129 = vector.multi_reduction <add>, %128, %cst_49 [1] : vector<2x64xf32> to vector<2xf32>
      %130 = vector.shape_cast %129 : vector<2xf32> to vector<2x1xf32>
      %cst_50 = arith.constant 6.400000e+01 : f32
      %131 = vector.broadcast %cst_50 : f32 to vector<2x1xf32>
      %132 = arith.divf %130, %131 : vector<2x1xf32>
      %133 = vector.broadcast %125 : vector<2x1xf32> to vector<2x64xf32>
      %134 = arith.subf %121, %133 : vector<2x64xf32>
      %cst_51 = arith.constant 9.99999974E-6 : f32
      %135 = vector.broadcast %cst_51 : f32 to vector<2x1xf32>
      %136 = arith.addf %132, %135 : vector<2x1xf32>
      %137 = math.rsqrt %136 : vector<2x1xf32>
      %138 = vector.broadcast %137 : vector<2x1xf32> to vector<2x64xf32>
      %139 = arith.mulf %134, %138 : vector<2x64xf32>
      %140 = vector.broadcast %106 : vector<1x64xf32> to vector<2x64xf32>
      %141 = arith.mulf %139, %140 : vector<2x64xf32>
      %142 = vector.broadcast %107 : vector<1x64xf32> to vector<2x64xf32>
      %143 = arith.addf %141, %142 : vector<2x64xf32>
      %144 = arith.index_cast %arg10 : i32 to index
      %c0_52 = arith.constant 0 : index
      %c0_53 = arith.constant 0 : index
      %145 = vector.load %arg8[%144, %c0_52, %c0_53] : memref<9x2x64xf32, #tpu.memory_space<vmem>>, vector<1x2x64xf32>
      %146 = vector.shape_cast %145 : vector<1x2x64xf32> to vector<2x64xf32>
      %147 = vector.shape_cast %143 : vector<2x64xf32> to vector<1x2x64xf32>
      tpu.vector_store %arg8[%144, %c0_52, %c0_53], %147 {strides = array<i32>} : memref<9x2x64xf32, #tpu.memory_space<vmem>>, vector<1x2x64xf32>,
    }
    %c9_i32_36 = arith.constant 9 : i32
    %109 = tpu.concatenate %82, %88, %85, %91 in 1 : vector<2x32xf32>, vector<2x32xf32>, vector<2x32xf32>, vector<2x32xf32> -> vector<2x128xf32>
    %110 = arith.truncf %109 : vector<2x128xf32> to vector<2x128xbf16>
    %c0_37 = arith.constant 0 : index
    %c0_38 = arith.constant 0 : index
    %111 = vector.load %arg6[%c0_37, %c0_38] : memref<128x64xbf16, #tpu.memory_space<vmem>>, vector<128x64xbf16>
    %cst_39 = arith.constant dense<0.000000e+00> : vector<2x64xf32>
    %112 = tpu.matmul %110, %111, %cst_39 {dimension_numbers = #tpu.dot_dimension_numbers<[1], [0], [0], [1], [0, 0, 1, 1], [], []>} : vector<2x128xbf16>, vector<128x64xbf16>, vector<2x64xf32> -> vector<2x64xf32>
    %c0_40 = arith.constant 0 : index
    %c0_41 = arith.constant 0 : index
    %113 = vector.load %arg7[%c0_40, %c0_41] : memref<1x64xf32, #tpu.memory_space<vmem>>, vector<1x64xf32>
    %114 = vector.broadcast %113 : vector<1x64xf32> to vector<2x64xf32>
    %115 = arith.addf %112, %114 : vector<2x64xf32>
    %cst_42 = arith.constant 0.000000e+00 : f32
    %116 = vector.broadcast %cst_42 : f32 to vector<2x64xf32>
    %117 = arith.maximumf %115, %116 : vector<2x64xf32>
    %c0_43 = arith.constant 0 : index
    %c0_44 = arith.constant 0 : index
    %118 = vector.load %arg9[%c0_43, %c0_44] : memref<2x64xf32, #tpu.memory_space<vmem>>, vector<2x64xf32>
    tpu.vector_store %arg9[%c0_43, %c0_44], %117 {strides = array<i32>} : memref<2x64xf32, #tpu.memory_space<vmem>>, vector<2x64xf32>,
    return
  }
  func.func @transform_0(%arg0: i32) -> (i32, i32, i32) {
    %c0_i32 = arith.constant 0 : i32
    %c0_i32_0 = arith.constant 0 : i32
    %c0_i32_1 = arith.constant 0 : i32
    return %c0_i32, %arg0, %c0_i32_0 : i32, i32, i32
  }
  func.func @transform_1(%arg0: i32) -> (i32, i32) {
    %c0_i32 = arith.constant 0 : i32
    %c0_i32_0 = arith.constant 0 : i32
    return %arg0, %c0_i32 : i32, i32
  }
  func.func @transform_2(%arg0: i32) -> (i32, i32) {
    %c0_i32 = arith.constant 0 : i32
    %c0_i32_0 = arith.constant 0 : i32
    %c0_i32_1 = arith.constant 0 : i32
    return %c0_i32, %c0_i32_0 : i32, i32
  }
  func.func @transform_3(%arg0: i32) -> (i32, i32) {
    %c0_i32 = arith.constant 0 : i32
    %c0_i32_0 = arith.constant 0 : i32
    %c0_i32_1 = arith.constant 0 : i32
    return %c0_i32, %c0_i32_0 : i32, i32
  }
  func.func @transform_4(%arg0: i32) -> (i32, i32) {
    %c0_i32 = arith.constant 0 : i32
    %c0_i32_0 = arith.constant 0 : i32
    %c0_i32_1 = arith.constant 0 : i32
    return %c0_i32, %c0_i32_0 : i32, i32
  }
  func.func @transform_5(%arg0: i32) -> (i32, i32) {
    %c0_i32 = arith.constant 0 : i32
    %c0_i32_0 = arith.constant 0 : i32
    %c0_i32_1 = arith.constant 0 : i32
    return %c0_i32, %c0_i32_0 : i32, i32
  }
  func.func @transform_6(%arg0: i32) -> (i32, i32) {
    %c0_i32 = arith.constant 0 : i32
    %c0_i32_0 = arith.constant 0 : i32
    %c0_i32_1 = arith.constant 0 : i32
    return %c0_i32, %c0_i32_0 : i32, i32
  }
  func.func @transform_7(%arg0: i32) -> (i32, i32, i32) {
    %c0_i32 = arith.constant 0 : i32
    %c0_i32_0 = arith.constant 0 : i32
    %c0_i32_1 = arith.constant 0 : i32
    return %c0_i32, %arg0, %c0_i32_0 : i32, i32, i32
  }
  func.func @transform_8(%arg0: i32) -> (i32, i32) {
    %c0_i32 = arith.constant 0 : i32
    %c0_i32_0 = arith.constant 0 : i32
    return %arg0, %c0_i32 : i32, i32
  }
}

module attributes {stable_mosaic.version = 11 : i64} {
  func.func @gates_matmul_kernel(%arg0: i32, %arg1: memref<18x112xbf16, #tpu.memory_space<vmem>>, %arg2: memref<112x256xbf16, #tpu.memory_space<vmem>>, %arg3: memref<1x256xf32, #tpu.memory_space<vmem>>, %arg4: memref<18x256xbf16, #tpu.memory_space<vmem>>) attributes {dimension_semantics = [#tpu.dimension_semantics<parallel>], iteration_bounds = array<i64: 1>, scalar_prefetch = 0 : i64, scratch_operands = 0 : i64, tpu.core_type = #tpu.core_type<tc>, window_params = [{transform_indices = @transform_0, window_bounds = array<i64: 18, 112>}, {pipeline_mode = #tpu.pipeline_mode<synchronous>, transform_indices = @transform_1, window_bounds = array<i64: 112, 256>}, {pipeline_mode = #tpu.pipeline_mode<synchronous>, transform_indices = @transform_2, window_bounds = array<i64: 1, 256>}, {transform_indices = @transform_3, window_bounds = array<i64: 18, 256>}]} {
    %c0 = arith.constant 0 : index
    %c0_0 = arith.constant 0 : index
    %0 = vector.load %arg1[%c0, %c0_0] : memref<18x112xbf16, #tpu.memory_space<vmem>>, vector<18x112xbf16>
    %c0_1 = arith.constant 0 : index
    %c0_2 = arith.constant 0 : index
    %1 = vector.load %arg2[%c0_1, %c0_2] : memref<112x256xbf16, #tpu.memory_space<vmem>>, vector<112x256xbf16>
    %cst = arith.constant dense<0.000000e+00> : vector<18x256xf32>
    %2 = tpu.matmul %0, %1, %cst {dimension_numbers = #tpu.dot_dimension_numbers<[1], [0], [0], [1], [0, 0, 1, 1], [], []>} : vector<18x112xbf16>, vector<112x256xbf16>, vector<18x256xf32> -> vector<18x256xf32>
    %c0_3 = arith.constant 0 : index
    %c0_4 = arith.constant 0 : index
    %3 = vector.load %arg3[%c0_3, %c0_4] : memref<1x256xf32, #tpu.memory_space<vmem>>, vector<1x256xf32>
    %4 = vector.broadcast %3 : vector<1x256xf32> to vector<18x256xf32>
    %5 = arith.addf %2, %4 : vector<18x256xf32>
    %6 = arith.truncf %5 : vector<18x256xf32> to vector<18x256xbf16>
    %c0_5 = arith.constant 0 : index
    %c0_6 = arith.constant 0 : index
    %7 = vector.load %arg4[%c0_5, %c0_6] : memref<18x256xbf16, #tpu.memory_space<vmem>>, vector<18x256xbf16>
    tpu.vector_store %arg4[%c0_5, %c0_6], %6 {strides = array<i32>} : memref<18x256xbf16, #tpu.memory_space<vmem>>, vector<18x256xbf16>,
    return
  }
  func.func @transform_0(%arg0: i32) -> (i32, i32) {
    %c0_i32 = arith.constant 0 : i32
    %c0_i32_0 = arith.constant 0 : i32
    return %arg0, %c0_i32 : i32, i32
  }
  func.func @transform_1(%arg0: i32) -> (i32, i32) {
    %c0_i32 = arith.constant 0 : i32
    %c0_i32_0 = arith.constant 0 : i32
    %c0_i32_1 = arith.constant 0 : i32
    return %c0_i32, %c0_i32_0 : i32, i32
  }
  func.func @transform_2(%arg0: i32) -> (i32, i32) {
    %c0_i32 = arith.constant 0 : i32
    %c0_i32_0 = arith.constant 0 : i32
    %c0_i32_1 = arith.constant 0 : i32
    return %c0_i32, %c0_i32_0 : i32, i32
  }
  func.func @transform_3(%arg0: i32) -> (i32, i32) {
    %c0_i32 = arith.constant 0 : i32
    %c0_i32_0 = arith.constant 0 : i32
    return %arg0, %c0_i32 : i32, i32
  }
}

</mosaic_0001>

<bundles_post_ra>
// kernel: _lambda_.2
= control target key start
LH: loop header
LB: loop body
LE: loop exit
PB: predicated region body
PF: predicated region fallthrough
CT: control target
= control target key end

     0   :  { %vm116_vm0 = vcmask 916480   ;;  %s384_s1 = inlined_call_operand.vmem [shape: bf16[112,256], index: 1, kind: input, shape index: {}]   ;;  %s385_s0 = inlined_call_operand.vmem [shape: bf16[18,112], index: 0, kind: input, shape index: {}]   ;;  %s386_s2 = inlined_call_operand.vmem [shape: f32[1,256], index: 2, kind: input, shape index: {}]   ;;  %s387_s3 = inlined_call_operand.vmem [shape: bf16[18,256], index: 3, kind: output, shape index: {}]  }
   0x1   :  { %v223_v0 = vld [vmem:[%s384_s1 + $0x60] sm:$0xf]  ;;  %v247_v1 = vld [vmem:[%s384_s1 + $0x64] sm:$0xf0]  ;;  %v246_v2 = vld [vmem:[%s384_s1 + $0x64] sm:$0xf] }
   0x2   :  { %v224_v3 = vor.u32 %v247_v1, %v223_v0  ;;  %v225_v4 = vld [vmem:[%s384_s1 + $0x68] sm:$0xf0]  ;;  %v215_v5 = vld [vmem:[%s384_s1 + $0x50] sm:$0xf]  ;;  %v245_v6 = vld [vmem:[%s384_s1 + $0x54] sm:$0xf0] }
   0x3   :  { %v228_v7 = vor.u32 %v246_v2, %v225_v4  ;;  %v244_v8 = vld [vmem:[%s384_s1 + $0x54] sm:$0xf]  ;;  %v217_v9 = vld [vmem:[%s384_s1 + $0x58] sm:$0xf0]  ;;  %v216_v10 = vor.u32 %v245_v6, %v215_v5  ;;  %v207_v12 = vld [vmem:[%s384_s1 + $0x40] sm:$0xf] }
   0x4   :  { %124 = vmatpush.bf16.msra.mxu0 %v224_v3  ;;  %248 = vmatpush.bf16.msra.mxu2 %v224_v3  ;;  %v220_v11 = vor.u32 %v244_v8, %v217_v9  ;;  %v243_v13 = vld [vmem:[%s384_s1 + $0x44] sm:$0xf0]  ;;  %v242_v14 = vld [vmem:[%s384_s1 + $0x44] sm:$0xf]  ;;  %v209_v15 = vld [vmem:[%s384_s1 + $0x48] sm:$0xf0] }
   0x5   :  { %142 = vmatpush.bf16.msra.mxu1 %v228_v7  ;;  %255 = vmatpush.bf16.msra.mxu3 %v228_v7  ;;  %v208_v16 = vor.u32 %v243_v13, %v207_v12  ;;  %v212_v17 = vor.u32 %v242_v14, %v209_v15  ;;  %v199_v18 = vld [vmem:[%s384_s1 + $0x30] sm:$0xf]  ;;  %v241_v19 = vld [vmem:[%s384_s1 + $0x34] sm:$0xf0]  ;;  %v240_v20 = vld [vmem:[%s384_s1 + $0x34] sm:$0xf] }
   0x6   :  { %v201_v21 = vld [vmem:[%s384_s1 + $0x38] sm:$0xf0]  ;;  %v200_v22 = vor.u32 %v241_v19, %v199_v18  ;;  %v191_v24 = vld [vmem:[%s384_s1 + $0x20] sm:$0xf]  ;;  %v239_v25 = vld [vmem:[%s384_s1 + $0x24] sm:$0xf0] }
   0x7   :  { %v204_v23 = vor.u32 %v240_v20, %v201_v21  ;;  %v238_v26 = vld [vmem:[%s384_s1 + $0x24] sm:$0xf]  ;;  %v193_v27 = vld [vmem:[%s384_s1 + $0x28] sm:$0xf0]  ;;  %v192_v28 = vor.u32 %v239_v25, %v191_v24  ;;  %v183_v30 = vld [vmem:[%s384_s1 + $0x10] sm:$0xf] }
   0x8   :  { %125 = vmatpush.bf16.msra.mxu0 %v216_v10  ;;  %249 = vmatpush.bf16.msra.mxu2 %v216_v10  ;;  %v196_v29 = vor.u32 %v238_v26, %v193_v27  ;;  %v237_v31 = vld [vmem:[%s384_s1 + $0x14] sm:$0xf0]  ;;  %v236_v32 = vld [vmem:[%s384_s1 + $0x14] sm:$0xf]  ;;  %v185_v33 = vld [vmem:[%s384_s1 + $0x18] sm:$0xf0] }
   0x9   :  { %143 = vmatpush.bf16.msra.mxu1 %v220_v11  ;;  %256 = vmatpush.bf16.msra.mxu3 %v220_v11  ;;  %v184_v34 = vor.u32 %v237_v31, %v183_v30  ;;  %v17_v35 = vld [vmem:[%s385_s0 + $0x8] sm:$0x1]  ;;  %v188_v36 = vor.u32 %v236_v32, %v185_v33  ;;  %v175_v37 = vld [vmem:[%s384_s1] sm:$0xf]  ;;  %v234_v39 = vld [vmem:[%s384_s1 + $0x4] sm:$0xf] }
   0xa   :  { %v235_v38 = vld [vmem:[%s384_s1 + $0x4] sm:$0xf0]  ;;  %v177_v40 = vld [vmem:[%s384_s1 + $0x8] sm:$0xf0]  ;;  %v43_v41 = vunpack.c.l.b16 %v17_v35  ;;  %v233_v44 = vld [vmem:[%s385_s0] sm:$0xff] }
   0xb   :  { %v176_v42 = vor.u32 %v235_v38, %v175_v37  ;;  %v180_v43 = vor.u32 %v234_v39, %v177_v40  ;;  %v32_v46 = vld [vmem:[%s386_s2] sm:$0x3] }
   0xc   :  { %126 = vmatpush.bf16.msra.mxu0 %v208_v16  ;;  %250 = vmatpush.bf16.msra.mxu2 %v208_v16  ;;  %v45_v45 = vpack.c.b16 %v43_v41, %v43_v41  ;;  %v34_v47 = vperm.slane %v32_v46, 0  ;;  %v35_v48 = vperm.slane %v32_v46, 1 }
   0xd   :  { %144 = vmatpush.bf16.msra.mxu1 %v212_v17  ;;  %257 = vmatpush.bf16.msra.mxu3 %v212_v17 }
  0x10   :  { %127 = vmatpush.bf16.msra.mxu0 %v200_v22  ;;  %251 = vmatpush.bf16.msra.mxu2 %v200_v22 }
  0x11   :  { %145 = vmatpush.bf16.msra.mxu1 %v204_v23  ;;  %258 = vmatpush.bf16.msra.mxu3 %v204_v23 }
  0x14   :  { %128 = vmatpush.bf16.msra.mxu0 %v192_v28  ;;  %252 = vmatpush.bf16.msra.mxu2 %v192_v28 }
  0x15   :  { %146 = vmatpush.bf16.msra.mxu1 %v196_v29  ;;  %259 = vmatpush.bf16.msra.mxu3 %v196_v29 }
  0x18   :  { %129 = vmatpush.bf16.msra.mxu0 %v184_v34  ;;  %253 = vmatpush.bf16.msra.mxu2 %v184_v34 }
  0x19   :  { %147 = vmatpush.bf16.msra.mxu1 %v188_v36  ;;  %260 = vmatpush.bf16.msra.mxu3 %v188_v36 }
  0x1c   :  { %130 = vmatpush.bf16.msra.mxu0 %v176_v42  ;;  %254 = vmatpush.bf16.msra.mxu2 %v176_v42 }
  0x1d   :  { %148 = vmatpush.bf16.msra.mxu1 %v180_v43  ;;  %261 = vmatpush.bf16.msra.mxu3 %v180_v43 }
  0x1f   :  { %229 = vmatmul.msk.bf16.vlgmr.msra.gmra.mxu0 %vm116_vm0, %v233_v44  ;;  %230 = vmatmul.msk.bf16.vlgmr.msra.gmra.mxu2 %vm116_vm0, %v45_v45 }
  0x20   :  { %231 = vmatmul.msk.bf16.vlgmr.msra.gmra.mxu1 %vm116_vm0, %v233_v44  ;;  %232 = vmatmul.msk.bf16.vlgmr.msra.gmra.mxu3 %vm116_vm0, %v45_v45 }
  0x9c   :  { %v132_v49 = vpop.f32.mrf.mxu0 }
  0x9d   :  { %v133_v50 = vadd.f32 %v132_v49, %v34_v47  ;;  %v150_v51 = vpop.f32.mrf.mxu1 }
  0x9e   :  { %v151_v52 = vadd.f32 %v150_v51, %v35_v48 }
  0xa0   :  { %v159_v53 = vpack.c.bf16 %v151_v52, %v133_v50 }
  0xa2   :  { %162 = vst [vmem:[%s387_s3] sm:$0xff] %v159_v53  ;;  %v137_v54 = vpop.f32.mrf.mxu2 }
  0xa3   :  { %v138_v55 = vadd.f32 %v137_v54, %v34_v47  ;;  %v155_v56 = vpop.f32.mrf.mxu3 }
  0xa4   :  { %v156_v57 = vadd.f32 %v155_v56, %v35_v48  ;;  %v134_v58 = vpop.f32.mrf.mxu0 }
  0xa5   :  { %v135_v59 = vadd.f32 %v134_v58, %v34_v47  ;;  %v152_v60 = vpop.f32.mrf.mxu1 }
  0xa6   :  { %v161_v61 = vpack.c.bf16 %v156_v57, %v138_v55  ;;  %v153_v62 = vadd.f32 %v152_v60, %v35_v48 }
  0xa8   :  { %164 = vst [vmem:[%s387_s3 + $0x10] sm:$0x11] %v161_v61  ;;  %v160_v63 = vpack.c.bf16 %v153_v62, %v135_v59 }
  0xaa   :  { %163 = vst [vmem:[%s387_s3 + $0x8] sm:$0xff] %v160_v63  ;;  %v139_v0 = vpop.f32.mrf.mxu2 }
  0xab   :  { %v157_v1 = vpop.f32.mrf.mxu3 }

// kernel: _lambda_.3
= control target key start
LH: loop header
LB: loop body
LE: loop exit
PB: predicated region body
PF: predicated region fallthrough
CT: control target
= control target key end

     0   :  { %14 = vsyncpa [#allocation3], 0  ;;  %v1305_v33 = vmov 0.0   ;;  %v1307_v34 = vmov 0.0   ;;  %v1309_v35 = vmov 0.0   ;;  %v1311_v36 = vmov 0.0   ;;  %s1612_s0 = inlined_call_operand.vmem [shape: bf16[9,2,256], index: 0, kind: input, shape index: {}]   ;;  %s1613_s1 = inlined_call_operand.vmem [shape: s32[2,1], index: 1, kind: input, shape index: {}]   ;;  %s1614_s2 = inlined_call_operand.vmem [shape: bf16[64,256], index: 2, kind: input, shape index: {}]   ;;  %s1615_s3 = inlined_call_operand.vmem [shape: f32[1,64], index: 3, kind: input, shape index: {}]   ;;  %s1616_s4 = inlined_call_operand.vmem [shape: f32[1,64], index: 4, kind: input, shape index: {}]   ;;  %s1617_s5 = inlined_call_operand.vmem [shape: bf16[128,64], index: 5, kind: input, shape index: {}]   ;;  %s1618_s6 = inlined_call_operand.vmem [shape: f32[1,64], index: 6, kind: input, shape index: {}]   ;;  %s1619_s7 = inlined_call_operand.hbm [shape: f32[9,2,64], index: 7, kind: output, shape index: {0}]   ;;  %s1620_s8 = inlined_call_operand.vmem [shape: f32[2,64], index: 8, kind: output, shape index: {1}]  }
   0x1   :  { %v1143_v0 = vld [vmem:[%s1613_s1] sm:$0x3]  ;;  %v1148_v1 = vld [vmem:[%s1614_s2 + $0x4] sm:$0xf]  ;;  %v1168_v5 = vld [vmem:[%s1614_s2 + $0x8] sm:$0xf0] }
   0x2   :  { %v1153_v2 = vld [vmem:[%s1614_s2] sm:$0xf]  ;;  %v1158_v3 = vld [vmem:[%s1614_s2 + $0x4] sm:$0xf]  ;;  %v1173_v6 = vld [vmem:[%s1614_s2 + $0x4] sm:$0xf0] }
   0x3   :  { %v1163_v4 = vld [vmem:[%s1614_s2] sm:$0xf]  ;;  %v1178_v7 = vld [vmem:[%s1614_s2 + $0x8] sm:$0xf0]  ;;  %v1183_v8 = vld [vmem:[%s1614_s2 + $0x4] sm:$0xf0] }
   0x4   :  { %v1188_v9 = vld [vmem:[%s1614_s2 + $0x14] sm:$0xf]  ;;  %v1193_v10 = vld [vmem:[%s1614_s2 + $0x10] sm:$0xf]  ;;  %v1208_v13 = vld [vmem:[%s1614_s2 + $0x18] sm:$0xf0] }
   0x5   :  { %v1198_v11 = vld [vmem:[%s1614_s2 + $0x14] sm:$0xf]  ;;  %v1203_v12 = vld [vmem:[%s1614_s2 + $0x10] sm:$0xf]  ;;  %v1213_v14 = vld [vmem:[%s1614_s2 + $0x14] sm:$0xf0] }
   0x6   :  { %v1218_v15 = vld [vmem:[%s1614_s2 + $0x18] sm:$0xf0]  ;;  %v1223_v16 = vld [vmem:[%s1614_s2 + $0x14] sm:$0xf0]  ;;  %v1228_v17 = vld [vmem:[%s1614_s2 + $0x24] sm:$0xf] }
   0x7   :  { %v1233_v18 = vld [vmem:[%s1614_s2 + $0x20] sm:$0xf]  ;;  %v1238_v19 = vld [vmem:[%s1614_s2 + $0x24] sm:$0xf]  ;;  %v1248_v21 = vld [vmem:[%s1614_s2 + $0x28] sm:$0xf0] }
   0x8   :  { %v1243_v20 = vld [vmem:[%s1614_s2 + $0x20] sm:$0xf]  ;;  %v1253_v22 = vld [vmem:[%s1614_s2 + $0x24] sm:$0xf0]  ;;  %v1258_v23 = vld [vmem:[%s1614_s2 + $0x28] sm:$0xf0] }
   0x9   :  { %v1263_v24 = vld [vmem:[%s1614_s2 + $0x24] sm:$0xf0]  ;;  %v1268_v25 = vld [vmem:[%s1614_s2 + $0x34] sm:$0xf]  ;;  %v1273_v26 = vld [vmem:[%s1614_s2 + $0x30] sm:$0xf] }
   0xa   :  { %v1278_v27 = vld [vmem:[%s1614_s2 + $0x34] sm:$0xf]  ;;  %v1283_v28 = vld [vmem:[%s1614_s2 + $0x30] sm:$0xf]  ;;  %v1288_v29 = vld [vmem:[%s1614_s2 + $0x38] sm:$0xf0] }
   0xb   :  { %v1293_v30 = vld [vmem:[%s1614_s2 + $0x34] sm:$0xf0]  ;;  %v1298_v31 = vld [vmem:[%s1614_s2 + $0x38] sm:$0xf0]  ;;  %s1313_s24 = smov 0  }
   0xc   :  { %v1303_v32 = vld [vmem:[%s1614_s2 + $0x34] sm:$0xf0] }
   0xd LB: > { %v774_v37 = vor.u32 %v1303_v32, %v1283_v28  ;;  %v778_v38 = vor.u32 %v1278_v27, %v1298_v31  ;;  %s1086_s2 = smov 32   ;;  %s1087_s25 = smov 64   ;;  %v766_v39 = vor.u32 %v1263_v24, %v1243_v20  ;;  %v770_v40 = vor.u32 %v1238_v19, %v1258_v23  ;;  %s1080_s24 = sphi %s1313_s24, %s44_s24   ;;  %v1076_v36 = vphi %v1311_v36, %v1628_v36   ;;  %v1072_v35 = vphi %v1309_v35, %v1627_v35   ;;  %v1068_v34 = vphi %v1307_v34, %v1626_v34   ;;  %v1064_v33 = vphi %v1305_v33, %v1625_v33  }
   0xe   : > { %53 = vrot.lane.b32.xlu0 %v1076_v36, %s1086_s2  ;;  %v758_v41 = vor.u32 %v1223_v16, %v1203_v12  ;;  %v762_v42 = vor.u32 %v1198_v11, %v1218_v15  ;;  %v750_v43 = vor.u32 %v1183_v8, %v1163_v4  ;;  %v754_v44 = vor.u32 %v1158_v3, %v1178_v7  ;;  %s1354_s26 = sshll.u32 %s1080_s24, 1  ;;  %s876_s28 = sshll.u32 %s1080_s24, 2 }
   0xf   : > { %111 = vmatpush.bf16.msra.mxu0 %v774_v37  ;;  %124 = vmatpush.bf16.msra.mxu1 %v778_v38  ;;  %vm60_vm0 = vcmask 261120   ;;  %vm103_vm1 = vcmask 523264   ;;  %s51_s27 = ssub.s32 8, %s1354_s26  ;;  %s1367_s10 = scalar_lea.vmem %s1612_s0, %s876_s28  ;;  %vm216_vm9 = vcmask 254976   ;;  %vm224_vm10 = vcmask 517376  }
  0x10   : > { %244 = vmatpush.bf16.msra.mxu2 %v774_v37  ;;  %257 = vmatpush.bf16.msra.mxu3 %v778_v38  ;;  %s1360_s29 = sshll.u32 %s51_s27, 1  ;;  %v135_v49 = vld [vmem:[%s1367_s10] sm:$0x3]  ;;  %v1088_v37 = vmov 0   ;;  %s226_s14 = ssub.s32 7, %s1354_s26 }
  0x11   : > { %s139_s13 = scalar_lea.vmem %s1612_s0, %s1360_s29  ;;  %v136_v51 = vunpack.c.l.bf16 %v135_v49  ;;  %944 = vset.pattern.permute.xlu2 %v1088_v37  ;;  %945 = vset.pattern.permute.xlu0 %v1088_v37  ;;  %s1424_s1 = sshll.u32 %s226_s14, 1 }
  0x12   : > { %v140_v50 = vld [vmem:[%s139_s13] sm:$0x3]  ;;  %946 = vset.pattern.permute.xlu1 %v1088_v37  ;;  %s272_s17 = scalar_lea.vmem %s1612_s0, %s1424_s1  ;;  %s50_s18 = sadd.s32 1, %s1354_s26 }
  0x13   : > { %112 = vmatpush.bf16.msra.mxu0 %v766_v39  ;;  %125 = vmatpush.bf16.msra.mxu1 %v770_v40  ;;  %v142_v52 = vrot.slane %v140_v50, 1  ;;  %v192_v50 = vstv %s1354_s26  ;;  %s215_s19 = scalar_lea.vmem [#allocation2], %s876_s28  ;;  %s223_s20 = scalar_lea.vmem [#allocation2], %s1360_s29 }
  0x14   : > { %245 = vmatpush.bf16.msra.mxu2 %v766_v39  ;;  %258 = vmatpush.bf16.msra.mxu3 %v770_v40  ;;  %vm193_vm2 = vcmp.lt.s32.totalorder %v192_v50, %v1143_v0  ;;  %s355_s21 = scalar_lea.vmem [#allocation2], %s1424_s1  ;;  %s44_s24 = sadd.s32 1, %s1080_s24  }
  0x15   : > { %v144_v56 = vunpack.c.l.bf16 %v142_v52  ;;  %p41_p0 = scmp.ge.s32.totalorder %s44_s24, 4  }
  0x16   : > { %57 = vrot.lane.b32.xlu0 %v1068_v34, %s1087_s25  ;;  %s1089_s22 = smov (%p41_p0), 32   ;;  %s1090_s23 = smov (%p41_p0), 64   ;;  %v815_v3 = vor.u32 (%p41_p0), %v1228_v17, %v1248_v21  ;;  %v803_v4 = vor.u32 (%p41_p0), %v1213_v14, %v1193_v10  ;;  %v807_v7 = vor.u32 (%p41_p0), %v1188_v9, %v1208_v13  ;;  %v795_v8 = vor.u32 (%p41_p0), %v1173_v6, %v1153_v2  ;;  %v826_v9 = vld [vmem:[%s1612_s0 + $0x10] sm:$0x3] (%p41_p0)  ;;  %v442_v2 = vld [vmem:[%s1612_s0] sm:$0x3] (%p41_p0) }
  0x17   : > { %113 = vmatpush.bf16.msra.mxu0 %v758_v41  ;;  %126 = vmatpush.bf16.msra.mxu1 %v762_v42  ;;  %v799_v11 = vor.u32 (%p41_p0), %v1148_v1, %v1168_v5  ;;  %v440_v1 = vunpack.c.l.bf16 (%p41_p0), %v826_v9  ;;  %v444_v5 = vrot.slane (%p41_p0), %v442_v2, 1  ;;  %vm494_vm12 = vcmp.gt.s32.totalorder (%p41_p0), %v1143_v0, 8  ;;  %s1552_s30 = smov (%p41_p0), 0  }
  0x18   : > { %246 = vmatpush.bf16.msra.mxu2 %v758_v41  ;;  %259 = vmatpush.bf16.msra.mxu3 %v762_v42  ;;  %vm495_vm13 = vcmp.gt.s32.totalorder (%p41_p0), %v1143_v0, 0 }
  0x19   :  { %v446_v14 = vunpack.c.l.bf16 (%p41_p0), %v444_v5 }
  0x1b   : > { %114 = vmatpush.bf16.msra.mxu0 %v750_v43  ;;  %127 = vmatpush.bf16.msra.mxu1 %v754_v44 }
  0x1c   : > { %247 = vmatpush.bf16.msra.mxu2 %v750_v43  ;;  %260 = vmatpush.bf16.msra.mxu3 %v754_v44 }
  0x80   : > { %v54_v45 = vpop.permute.xlu0 %53 }
  0x88   : > { %v58_v46 = vpop.permute.xlu0 %57 }
  0x89   : > { %v61_v47 = vsel %vm60_vm0, %v54_v45, %v58_v46 }
  0x8a   : > { %v62_v48 = vpack.c.bf16 %v61_v47, %v61_v47 }
  0x8c   : > { %779 = vmatmul.msk.bf16.vlgmr.msra.gmra.mxu0 %vm103_vm1, %v62_v48  ;;  %780 = vmatmul.msk.bf16.vlgmr.msra.gmra.mxu1 %vm103_vm1, %v62_v48 }
 0x109   : > { %v116_v53 = vpop.f32.mrf.mxu0  ;;  %v129_v54 = vpop.f32.mrf.mxu1 }
 0x10a   : > { %v137_v55 = vadd.f32 %v136_v51, %v116_v53  ;;  %v145_v57 = vadd.f32 %v144_v56, %v129_v54  ;;  %v196_v51 = vsel %vm193_vm2, 1, %v1088_v37 }
 0x10c   : > { %947 = vtanh.f32 %v137_v55  ;;  %v146_v62 = vsub.f32 0.0, %v137_v55  ;;  %v169_v38 = vsub.f32 0.0, %v145_v57 }
 0x10d   : > { %949 = vtanh.f32 %v145_v57 }
 0x10e   : > { %v147_v63 = vmul.f32 1.442695, %v146_v62  ;;  %v170_v39 = vmul.f32 1.442695, %v169_v38 }
 0x110   : > { %951 = vpow2.f32 %v147_v63 }
 0x111   : > { %v118_v58 = vpop.f32.mrf.mxu0  ;;  %v131_v59 = vpop.f32.mrf.mxu1  ;;  %953 = vpow2.f32 %v170_v39 }
 0x112   : > { %v948_v60 = vpop.eup %947  ;;  %v194_v59 = vstv %s51_s27 }
 0x113   : > { %154 = vrot.lane.b32.xlu1 %v948_v60, %s1087_s25  ;;  %v950_v61 = vpop.eup %949  ;;  %vm195_vm3 = vcmp.lt.s32.totalorder %v194_v59, %v1143_v0 }
 0x114   : > { %v203_v60 = vsel %vm195_vm3, 1, %v1088_v37 }
 0x116   : > { %v952_v40 = vpop.eup %951 }
 0x117   : > { %v149_v41 = vadd.f32 1.0, %v952_v40  ;;  %v954_v42 = vpop.eup %953 }
 0x118   : > { %v172_v43 = vadd.f32 1.0, %v954_v42 }
 0x119   : > { %955 = vrcp.f32 %v149_v41 }
 0x11a   : > { %957 = vrcp.f32 %v172_v43 }
 0x11b   : > { %177 = vrot.lane.b32.xlu1 %v950_v61, %s1087_s25 }
 0x11f   : > { %v956_v44 = vpop.eup %955 }
 0x120   : > { %v958_v47 = vpop.eup %957  ;;  %v152_v52 = vmul.f32 %v1072_v35, %v956_v44 }
 0x121   : > { %v175_v55 = vmul.f32 %v1064_v33, %v958_v47 }
 0x185   : > { %v155_v45 = vpop.permute.xlu1 %154 }
 0x186   : > { %v157_v46 = vmul.f32 %v956_v44, %v155_v45 }
 0x188   : > { %159 = vrot.lane.b32.xlu2 %v157_v46, %s1086_s2 }
 0x18d   : > { %v178_v48 = vpop.permute.xlu1 %177 }
 0x18e   : > { %v180_v49 = vmul.f32 %v958_v47, %v178_v48 }
 0x190   : > { %182 = vrot.lane.b32.xlu2 %v180_v49, %s1086_s2  ;;  %v787_v49 = vld [vmem:[%s1367_s10 + $0x2] sm:$0x3] }
 0x191   : > { %v269_v50 = vunpack.c.l.bf16 %v787_v49  ;;  %v325_v49 = vstv %s50_s18 }
 0x192   : > { %vm326_vm6 = vcmp.lt.s32.totalorder %v325_v49, %v1143_v0 }
 0x198   : > { %198 = vperm.xlu2 %944, %v196_v51  }
 0x1e2   : > { %v160_v53 = vpop.permute.xlu2 %159 }
 0x1e3   : > { %v1385_v54 = vadd.f32 %v160_v53, %v152_v52 }
 0x1e5   : > { %959 = vtanh.f32 %v1385_v54 }
 0x1ea   : > { %v183_v56 = vpop.permute.xlu2 %182 }
 0x1eb   : > { %v960_v57 = vpop.eup %959  ;;  %v1389_v58 = vadd.f32 %v183_v56, %v175_v55 }
 0x1ec   : > { %165 = vrot.lane.b32.xlu0 %v960_v57, %s1087_s25 }
 0x1ed   : > { %961 = vtanh.f32 %v1389_v58 }
 0x1f2   : > { %v1398_v62 = vpop.permute.xlu2 %198 }
 0x1f3   : > { %v962_v61 = vpop.eup %961  ;;  %vm200_vm4 = vcmp.eq.s32.totalorder %v1398_v62, 1 }
 0x1f4   : > { %205 = vperm.xlu0 %945, %v203_v60   ;;  %188 = vrot.lane.b32.xlu1 %v962_v61, %s1087_s25 }
 0x25e   : > { %v166_v63 = vpop.permute.xlu0 %165 }
 0x25f   : > { %v1400_v38 = vmul.f32 %v956_v44, %v166_v63 }
 0x261   : > { %v1407_v39 = vsel %vm200_vm4, %v1400_v38, %v1076_v36 }
 0x262   : > { %228 = vrot.lane.b32.xlu1 %v1407_v39, %s1086_s2 }
 0x266   : > { %v206_v40 = vpop.permute.xlu0 %205  ;;  %v189_v41 = vpop.permute.xlu1 %188 }
 0x267   : > { %vm207_vm5 = vcmp.eq.s32.totalorder %v206_v40, 1  ;;  %v191_v42 = vmul.f32 %v958_v47, %v189_v41  ;;  %v202_v40 = vsel %vm200_vm4, %v1385_v54, %v1072_v35 }
 0x269   : > { %v1413_v43 = vsel %vm207_vm5, %v191_v42, %v1068_v34  ;;  %v218_v44 = vsel %vm207_vm5, %v191_v42, 0.0  ;;  %v273_v34 = vld [vmem:[%s272_s17] sm:$0x3] }
 0x26a   : > { %232 = vrot.lane.b32.xlu2 %v1413_v43, %s1087_s25  ;;  %v275_v47 = vrot.slane %v273_v34, 1 }
 0x26c   : > { %v277_v51 = vunpack.c.l.bf16 %v275_v47 }
 0x2c4   : > { %v233_v36 = vpop.permute.xlu2 %232 }
 0x2d4   : > { %v229_v45 = vpop.permute.xlu1 %228 }
 0x2d5   : > { %v235_v46 = vsel %vm60_vm0, %v229_v45, %v233_v36 }
 0x2d6   : > { %v236_v48 = vpack.c.bf16 %v235_v46, %v235_v46 }
 0x2d8   : > { %783 = vmatmul.msk.bf16.vlgmr.msra.gmra.mxu2 %vm103_vm1, %v236_v48  ;;  %784 = vmatmul.msk.bf16.vlgmr.msra.gmra.mxu3 %vm103_vm1, %v236_v48 }
 0x35b   : > { %v249_v52 = vpop.f32.mrf.mxu2  ;;  %v262_v53 = vpop.f32.mrf.mxu3 }
 0x35c   : > { %v270_v55 = vadd.f32 %v269_v50, %v249_v52  ;;  %v278_v56 = vadd.f32 %v277_v51, %v262_v53  ;;  %v329_v50 = vsel %vm326_vm6, 1, %v1088_v37 }
 0x35e   : > { %963 = vtanh.f32 %v270_v55  ;;  %v302_v63 = vsub.f32 0.0, %v278_v56  ;;  %v279_v45 = vsub.f32 0.0, %v270_v55 }
 0x35f   : > { %965 = vtanh.f32 %v278_v56 }
 0x360   : > { %v303_v41 = vmul.f32 1.442695, %v302_v63  ;;  %v280_v48 = vmul.f32 1.442695, %v279_v45 }
 0x362   : > { %967 = vpow2.f32 %v303_v41 }
 0x363   : > { %v251_v57 = vpop.f32.mrf.mxu2  ;;  %v264_v59 = vpop.f32.mrf.mxu3 }
 0x364   : > { %v964_v60 = vpop.eup %963  ;;  %v209_v57 = vsel %vm207_vm5, %v1389_v58, %v1064_v33 }
 0x365   : > { %v966_v61 = vpop.eup %965  ;;  %287 = vrot.lane.b32.xlu1 %v964_v60, %s1087_s25 }
 0x366   : > { %310 = vrot.lane.b32.xlu2 %v966_v61, %s1087_s25 }
 0x368   : > { %v968_v42 = vpop.eup %967 }
 0x369   : > { %v305_v36 = vadd.f32 1.0, %v968_v42 }
 0x36b   : > { %969 = vrcp.f32 %v305_v36 }
 0x36c   : > { %971 = vpow2.f32 %v280_v48  ;;  %v327_v48 = vstv %s226_s14 }
 0x36d   : > { %vm328_vm8 = vcmp.lt.s32.totalorder %v327_v48, %v1143_v0 }
 0x371   : > { %v970_v46 = vpop.eup %969 }
 0x372   : > { %v972_v51 = vpop.eup %971  ;;  %v308_v59 = vmul.f32 %v970_v46, %v209_v57 }
 0x373   : > { %v282_v52 = vadd.f32 1.0, %v972_v51 }
 0x375   : > { %973 = vrcp.f32 %v282_v52 }
 0x37b   : > { %v974_v53 = vpop.eup %973 }
 0x37c   : > { %v285_v58 = vmul.f32 %v974_v53, %v202_v40 }
 0x3c0   : > { %v311_v34 = vpop.permute.xlu2 %310 }
 0x3c1   : > { %v313_v47 = vmul.f32 %v970_v46, %v311_v34 }
 0x3c3   : > { %315 = vrot.lane.b32.xlu1 %v313_v47, %s1086_s2 }
 0x3cb   : > { %331 = vperm.xlu1 %946, %v329_v50  }
 0x3d3   : > { %220 = vrot.lane.b32.xlu1 %v218_v44, %s1087_s25  ;;  %v210_v44 = vsel %vm200_vm4, %v1400_v38, 0.0  ;;  %v336_v38 = vsel %vm328_vm8, 1, %v1088_v37 }
 0x3d7   : > { %v288_v55 = vpop.permute.xlu1 %287 }
 0x3d8   : > { %v290_v56 = vmul.f32 %v974_v53, %v288_v55 }
 0x3da   : > { %292 = vrot.lane.b32.xlu0 %v290_v56, %s1086_s2  ;;  %v823_v56 = vor.u32 (%p41_p0), %v1268_v25, %v1288_v29  ;;  %v1091_v25 = vmov (%p41_p0), 0  }
 0x3db   :  { %980 = vset.pattern.permute.xlu0 (%p41_p0), %v1091_v25 }
 0x3dc   :  { %429 = vmatpush.bf16.msra.mxu1 (%p41_p0), %v823_v56  ;;  %v526_v56 = vld [vmem:[%s1616_s4] sm:$0x1] (%p41_p0) }
 0x3e0   :  { %430 = vmatpush.bf16.msra.mxu1 (%p41_p0), %v815_v3 }
 0x3e4   :  { %431 = vmatpush.bf16.msra.mxu1 (%p41_p0), %v807_v7 }
 0x3e8   :  { %432 = vmatpush.bf16.msra.mxu1 (%p41_p0), %v799_v11 }
 0x435   : > { %v316_v60 = vpop.permute.xlu1 %315 }
 0x436   : > { %v318_v61 = vadd.f32 %v316_v60, %v308_v59 }
 0x438   : > { %975 = vtanh.f32 %v318_v61 }
 0x43d   : > { %v332_v33 = vpop.permute.xlu1 %331 }
 0x43e   : > { %v976_v63 = vpop.eup %975  ;;  %vm333_vm7 = vcmp.eq.s32.totalorder %v332_v33, 1 }
 0x43f   : > { %321 = vrot.lane.b32.xlu0 %v976_v63, %s1087_s25 }
 0x445   : > { %v221_v52 = vpop.permute.xlu1 %220 }
 0x447   : > { %212 = vrot.lane.b32.xlu0 %v210_v44, %s1086_s2 }
 0x44c   : > { %v293_v41 = vpop.permute.xlu0 %292 }
 0x44d   : > { %v295_v42 = vadd.f32 %v293_v41, %v285_v58 }
 0x44f   : > { %977 = vtanh.f32 %v295_v42  ;;  %v1451_v35 = vsel %vm333_vm7, %v295_v42, %v202_v40   ;;  %v496_v40 = vsel (%p41_p0), %vm494_vm12, 1, %v1091_v25 }
 0x450   : > { %v1621_v45 = vmov %v1451_v35 }
 0x455   : > { %v978_v36 = vpop.eup %977 }
 0x456   : > { %298 = vrot.lane.b32.xlu2 %v978_v36, %s1087_s25 }
 0x45e   : > { %338 = vperm.xlu2 %944, %v336_v38  }
 0x466   :  { %979 = vset.pattern.permute.xlu2 (%p41_p0), %v1091_v25 }
 0x4b0   : > { %v299_v54 = vpop.permute.xlu2 %298 }
 0x4b1   : > { %v322_v62 = vpop.permute.xlu0 %321  ;;  %v301_v34 = vmul.f32 %v974_v53, %v299_v54  ;;  %v503_v54 = vsel (%p41_p0), %vm495_vm13, 1, %v1091_v25 }
 0x4b2   : > { %v324_v35 = vmul.f32 %v970_v46, %v322_v62 }
 0x4b3   : > { %v1459_v36 = vsel %vm333_vm7, %v301_v34, %v1407_v39   ;;  %v343_v49 = vsel %vm333_vm7, %v301_v34, 0.0 }
 0x4b4   : > { %v1622_v47 = vmov %v1459_v36  ;;  %345 = vrot.lane.b32.xlu2 %v343_v49, %s1086_s2 }
 0x4b5   : > { %v1628_v36 = vmov %v1622_v47 }
 0x4b8   : > { %v339_v50 = vpop.permute.xlu2 %338 }
 0x4b9   : > { %v213_v51 = vpop.permute.xlu0 %212  ;;  %vm340_vm11 = vcmp.eq.s32.totalorder %v339_v50, 1 }
 0x4ba   : > { %217 = vst.msk [vmem:[%s215_s19] sm:$0x3] %vm216_vm9, %v213_v51  ;;  %v1466_v34 = vsel %vm340_vm11, %v324_v35, %v1413_v43   ;;  %v1468_v33 = vsel %vm340_vm11, %v318_v61, %v209_v57   ;;  %v350_v53 = vsel %vm340_vm11, %v324_v35, 0.0  ;;  %v1627_v35 = vmov %v1621_v45 }
 0x4bb   : > { %v1623_v37 = vmov %v1466_v34  ;;  %v1624_v39 = vmov %v1468_v33  ;;  %225 = vst.msk [vmem:[%s223_s20] sm:$0x3] %vm224_vm10, %v221_v52  ;;  %352 = vrot.lane.b32.xlu0 %v350_v53, %s1087_s25  ;;  %v819_v43 = vor.u32 (%p41_p0), %v1293_v30, %v1273_v26  ;;  %v811_v57 = vor.u32 (%p41_p0), %v1253_v22, %v1233_v18 }
 0x4bc   : > { %v1625_v33 = vmov %v1624_v39  ;;  %v1626_v34 = vmov %v1623_v37 }
 0x4bd   :  { %416 = vmatpush.bf16.msra.mxu0 (%p41_p0), %v819_v43 }
 0x4c1   :  { %417 = vmatpush.bf16.msra.mxu0 (%p41_p0), %v811_v57 }
 0x4c3   :  { %358 = vrot.lane.b32.xlu0 (%p41_p0), %v1622_v47, %s1089_s22 }
 0x4c5   :  { %418 = vmatpush.bf16.msra.mxu0 (%p41_p0), %v803_v4 }
 0x4c9   :  { %419 = vmatpush.bf16.msra.mxu0 (%p41_p0), %v795_v8 }
 0x4cb   :  { %362 = vrot.lane.b32.xlu0 (%p41_p0), %v1623_v37, %s1090_s23 }
 0x50e   : > { %v346_v46 = vpop.permute.xlu2 %345 }
 0x50f   : > { %791 = vst.msk [vmem:[%s215_s19 + $0x2] sm:$0x3] %vm216_vm9, %v346_v46 }
 0x52a   :  { %43 = sbr.rel (!%p41_p0) target bundleno = 13 (0xd), region = 81 }
 0x52d   : > { %v353_v55 = vpop.permute.xlu0 %352 }
 0x52e   : > { %356 = vst.msk [vmem:[%s355_s21] sm:$0x3] %vm224_vm10, %v353_v55 }
 0x535   :  { %v359_v12 = vpop.permute.xlu0 %358 }
 0x53d   :  { %v363_v15 = vpop.permute.xlu0 %362 }
 0x53e   :  { %v366_v16 = vsel %vm60_vm0, %v359_v12, %v363_v15 }
 0x53f   :  { %v367_v17 = vpack.c.bf16 %v366_v16, %v366_v16 }
 0x541   :  { %824 = vmatmul.msk.bf16.vlgmr.msra.gmra.mxu0 %vm103_vm1, %v367_v17  ;;  %825 = vmatmul.msk.bf16.vlgmr.msra.gmra.mxu1 %vm103_vm1, %v367_v17 }
 0x5be   :  { %v421_v6 = vpop.f32.mrf.mxu0  ;;  %v434_v10 = vpop.f32.mrf.mxu1 }
 0x5bf   :  { %v441_v13 = vadd.f32 %v440_v1, %v421_v6  ;;  %v447_v18 = vadd.f32 %v446_v14, %v434_v10 }
 0x5c1   :  { %981 = vtanh.f32 %v441_v13  ;;  %v448_v23 = vsub.f32 0.0, %v441_v13  ;;  %v471_v26 = vsub.f32 0.0, %v447_v18 }
 0x5c2   :  { %983 = vtanh.f32 %v447_v18 }
 0x5c3   :  { %v449_v24 = vmul.f32 1.442695, %v448_v23  ;;  %v472_v27 = vmul.f32 1.442695, %v471_v26 }
 0x5c5   :  { %985 = vpow2.f32 %v449_v24 }
 0x5c6   :  { %v423_v19 = vpop.f32.mrf.mxu0  ;;  %v436_v20 = vpop.f32.mrf.mxu1  ;;  %987 = vpow2.f32 %v472_v27 }
 0x5c7   :  { %v982_v21 = vpop.eup %981 }
 0x5c8   :  { %456 = vrot.lane.b32.xlu1 %v982_v21, %s1090_s23  ;;  %v984_v22 = vpop.eup %983 }
 0x5cb   :  { %v986_v28 = vpop.eup %985 }
 0x5cc   :  { %v451_v29 = vadd.f32 1.0, %v986_v28  ;;  %v988_v30 = vpop.eup %987 }
 0x5cd   :  { %v474_v31 = vadd.f32 1.0, %v988_v30 }
 0x5ce   :  { %989 = vrcp.f32 %v451_v29 }
 0x5cf   :  { %991 = vrcp.f32 %v474_v31 }
 0x5d0   :  { %479 = vrot.lane.b32.xlu1 %v984_v22, %s1090_s23 }
 0x5d4   :  { %v990_v32 = vpop.eup %989 }
 0x5d5   :  { %v992_v61 = vpop.eup %991  ;;  %v454_v33 = vmul.f32 %v990_v32, %v1621_v45 }
 0x5d6   :  { %v477_v42 = vmul.f32 %v992_v61, %v1624_v39 }
 0x63a   :  { %v457_v59 = vpop.permute.xlu1 %456 }
 0x63b   :  { %v459_v60 = vmul.f32 %v990_v32, %v457_v59 }
 0x63d   :  { %461 = vrot.lane.b32.xlu2 %v459_v60, %s1089_s22 }
 0x642   :  { %v480_v63 = vpop.permute.xlu1 %479 }
 0x643   :  { %v482_v44 = vmul.f32 %v992_v61, %v480_v63 }
 0x645   :  { %484 = vrot.lane.b32.xlu2 %v482_v44, %s1089_s22 }
 0x64d   :  { %498 = vperm.xlu2 %979, %v496_v40  }
 0x697   :  { %v462_v58 = vpop.permute.xlu2 %461 }
 0x698   :  { %v464_v41 = vadd.f32 %v462_v58, %v454_v33 }
 0x69a   :  { %993 = vtanh.f32 %v464_v41 }
 0x69f   :  { %v485_v36 = vpop.permute.xlu2 %484 }
 0x6a0   :  { %v994_v48 = vpop.eup %993  ;;  %v487_v38 = vadd.f32 %v485_v36, %v477_v42 }
 0x6a1   :  { %467 = vrot.lane.b32.xlu0 %v994_v48, %s1090_s23 }
 0x6a2   :  { %995 = vtanh.f32 %v487_v38 }
 0x6a7   :  { %v499_v62 = vpop.permute.xlu2 %498 }
 0x6a8   :  { %v996_v34 = vpop.eup %995  ;;  %vm500_vm14 = vcmp.eq.s32.totalorder %v499_v62, 1 }
 0x6a9   :  { %v1530_v49 = vsel %vm500_vm14, %v464_v41, %v1621_v45  ;;  %490 = vrot.lane.b32.xlu1 %v996_v34, %s1090_s23  ;;  %505 = vperm.xlu0 %980, %v503_v54  }
 0x713   :  { %v468_v35 = vpop.permute.xlu0 %467 }
 0x714   :  { %v470_v50 = vmul.f32 %v990_v32, %v468_v35 }
 0x716   :  { %v1534_v51 = vsel %vm500_vm14, %v470_v50, %v1622_v47  ;;  %v510_v52 = vsel %vm500_vm14, %v470_v50, 0.0  ;;  %v525_v47 = vld [vmem:[%s1615_s3] sm:$0x1] }
 0x717   :  { %512 = vrot.lane.b32.xlu1 %v510_v52, %s1089_s22 }
 0x71b   :  { %v491_v53 = vpop.permute.xlu1 %490  ;;  %v506_v0 = vpop.permute.xlu0 %505 }
 0x71c   :  { %v493_v46 = vmul.f32 %v992_v61, %v491_v53  ;;  %vm507_vm15 = vcmp.eq.s32.totalorder %v506_v0, 1 }
 0x71d   :  { %v1538_v55 = vsel %vm507_vm15, %v487_v38, %v1624_v39 }
 0x71e   :  { %v1541_v45 = vsel %vm507_vm15, %v493_v46, %v1623_v37  ;;  %v518_v43 = vsel %vm507_vm15, %v493_v46, 0.0 }
 0x71f   :  { %520 = vrot.lane.b32.xlu2 %v518_v43, %s1090_s23 }
 0x779   :  { %v521_v57 = vpop.permute.xlu2 %520 }
 0x77a   :  { %524 = vst.msk [vmem:[#allocation2] sm:$0x3] %vm224_vm10, %v521_v57 }
 0x789   :  { %v513_v3 = vpop.permute.xlu1 %512 }
 0x78a   :  { %517 = vst.msk [vmem:[#allocation2 + $0x10] sm:$0x3] %vm216_vm9, %v513_v3 }
 0x78b LB: > { %s827_s9 = sshll.u32 %s1084_s30, 1  ;;  %vm536_vm2 = vcmask 517120   ;;  %v1092_v4 = vmov 64.0   ;;  %v567_v23 = vperm.slane %v525_v47, 0  ;;  %v571_v25 = vperm.slane %v526_v56, 0  ;;  %s532_s30 = sadd.s32 1, %s1084_s30   ;;  %s1084_s30 = sphi %s1552_s30, %s532_s30  }
 0x78c   : > { %s1558_s3 = scalar_lea.vmem [#allocation2], %s827_s9  ;;  %997 = vrcp.f32 %v1092_v4  ;;  %p529_p1 = scmp.ge.s32.totalorder %s532_s30, 9  }
 0x78d   :  { %v1001_v29 = vpack.i.bf16 (%p529_p1), %v1530_v49, %v1534_v51  ;;  %v886_v30 = vld [vmem:[%s1617_s5 + $0x38] sm:$0xff] (%p529_p1)  ;;  %v885_v31 = vld [vmem:[%s1617_s5 + $0x30] sm:$0xff] (%p529_p1)  ;;  %v1006_v32 = vpack.i.bf16 (%p529_p1), %v1538_v55, %v1541_v45  ;;  %v884_v59 = vld [vmem:[%s1617_s5 + $0x28] sm:$0xff] (%p529_p1)  ;;  %vm593_vm7 = vcmask (%p529_p1), 785408   ;;  %s1093_s2 = smov (%p529_p1), [#allocation2]   ;;  %s1094_s27 = smov (%p529_p1), 2  }
 0x78e   :  { %664 = vmatpush.bf16.msra.mxu2 (%p529_p1), %v886_v30  ;;  %v883_v60 = vld [vmem:[%s1617_s5 + $0x20] sm:$0xff] (%p529_p1)  ;;  %v882_v61 = vld [vmem:[%s1617_s5 + $0x18] sm:$0xff] (%p529_p1)  ;;  %v881_v63 = vld [vmem:[%s1617_s5 + $0x10] sm:$0xff] (%p529_p1)  ;;  %s684_s25 = sshll.u32 (%p529_p1), %s1093_s2, 4  ;;  %s685_s25 = int_to_ptr.vmem [resolvable:$true] %s684_s25 }
 0x78f   :  { %v880_v44 = vld [vmem:[%s1617_s5 + $0x8] sm:$0xff] (%p529_p1)  ;;  %v879_v40 = vld [vmem:[%s1617_s5] sm:$0xff] (%p529_p1)  ;;  %s686_s5 = sshll.u32 (%p529_p1), %s1619_s7, 4  ;;  %s687_s5 = int_to_ptr.hbm [resolvable:$true] %s686_s5 }
 0x790   :  { %v1011_v49 = vld [vmem:[%s1618_s6] ss:$0 sm:$0xff] (%p529_p1) }
 0x791   : > { %v535_v37 = vld [vmem:[%s1558_s3] sm:$0x3] }
 0x792   : > { %v537_v39 = vsel %vm536_vm2, %v535_v37, 0.0  ;;  %v998_v7 = vpop.eup %997  ;;  %665 = vmatpush.bf16.msra.mxu2 (%p529_p1), %v885_v31 }
 0x793   : > { %538 = vadd.xlane.f32.xlu0 %v537_v39  ;;  %v541_v8 = vmul.f32 64.0, %v998_v7  ;;  %vm545_vm3 = vweird.f32 %v998_v7 }
 0x795   : > { %v542_v11 = vsub.f32 1.0, %v541_v8 }
 0x796   :  { %666 = vmatpush.bf16.msra.mxu2 (%p529_p1), %v884_v59 }
 0x797   : > { %v543_v12 = vmul.f32 %v998_v7, %v542_v11 }
 0x799   : > { %v544_v15 = vadd.f32 %v998_v7, %v543_v12 }
 0x79a   :  { %667 = vmatpush.bf16.msra.mxu2 (%p529_p1), %v883_v60 }
 0x79b   : > { %v546_v16 = vsel %vm545_vm3, %v998_v7, %v544_v15 }
 0x79e   :  { %668 = vmatpush.bf16.msra.mxu2 (%p529_p1), %v882_v61 }
 0x7a2   :  { %669 = vmatpush.bf16.msra.mxu2 (%p529_p1), %v881_v63 }
 0x7a6   :  { %670 = vmatpush.bf16.msra.mxu2 (%p529_p1), %v880_v44 }
 0x7aa   :  { %671 = vmatpush.bf16.msra.mxu2 (%p529_p1), %v879_v40 }
 0x806   : > { %v539_v17 = vpop.xlane.xlu0 %538 }
 0x807   : > { %v547_v9 = vmul.f32 %v546_v16, %v539_v17 }
 0x809   : > { %v548_v2 = vsub.f32 %v535_v37, %v547_v9 }
 0x80b   : > { %v549_v1 = vmul.f32 %v548_v2, %v548_v2 }
 0x80d   : > { %v550_v5 = vsel %vm536_vm2, %v549_v1, 0.0 }
 0x80e   : > { %551 = vadd.xlane.f32.xlu0 %v550_v5 }
 0x822   :  { %1002 = vrot.lane.b32.xlu0 (%p529_p1), %v1001_v29, %s1089_s22 }
 0x82a   :  { %1007 = vrot.lane.b32.xlu0 (%p529_p1), %v1006_v32, %s1090_s23 }
 0x881   : > { %v552_v6 = vpop.xlane.xlu0 %551 }
 0x882   : > { %v553_v10 = vmul.f32 %v552_v6, %v546_v16 }
 0x884   : > { %v554_v13 = vadd.f32 1e-05, %v553_v10 }
 0x886   : > { %999 = vrsqrt.f32 %v554_v13  ;;  %vm561_vm5 = vweird.f32 %v554_v13 }
 0x88c   : > { %v1000_v14 = vpop.eup %999 }
 0x88d   : > { %v556_v18 = vmul.f32 %v1000_v14, %v554_v13  ;;  %vm562_vm4 = vweird.f32 %v1000_v14 }
 0x88e   : > { %vm563_vm6 = vmor %vm561_vm5, %vm562_vm4 }
 0x88f   : > { %v557_v19 = vmul.f32 %v1000_v14, %v556_v18 }
 0x891   : > { %v558_v20 = vmul.f32 0.5, %v557_v19 }
 0x893   : > { %v559_v21 = vsub.f32 1.5, %v558_v20 }
 0x894   :  { %v1003_v33 = vpop.permute.xlu0 (%p529_p1), %1002 }
 0x895   : > { %v560_v22 = vmul.f32 %v1000_v14, %v559_v21  ;;  %v1004_v41 = vunpack.i.l.bf16 (%p529_p1), %v1003_v33  ;;  %v1005_v36 = vunpack.i.h.bf16 (%p529_p1), %v1003_v33 }
 0x897   : > { %v564_v24 = vsel %vm563_vm6, %v1000_v14, %v560_v22 }
 0x898   : > { %v565_v26 = vmul.f32 %v564_v24, %v548_v2 }
 0x89a   : > { %v569_v27 = vmul.f32 %v567_v23, %v565_v26  ;;  %531 = sbr.rel (!%p529_p1) target bundleno = 1931 (0x78b), region = 92 }
 0x89c   : > { %v573_v28 = vadd.f32 %v571_v25, %v569_v27  ;;  %v1008_v58 = vpop.permute.xlu0 (%p529_p1), %1007 }
 0x89d   :  { %v1009_v42 = vunpack.i.l.bf16 (%p529_p1), %v1008_v58  ;;  %v1010_v48 = vunpack.i.h.bf16 (%p529_p1), %v1008_v58 }
 0x89e   : > { %574 = vst.msk [vmem:[%s1558_s3] sm:$0x3] %vm536_vm2, %v573_v28 }
 0x89f   :  { %v591_v38 = vsel %vm60_vm0, %v1004_v41, %v1009_v42  ;;  %692 = dma.vmem_to_hbm [thread:$0]  %s685_s25, 288, %s687_s5, [#allocation3], %s1089_s22, %s1089_s22, %s1094_s27  }
 0x8a0   :  { %v592_v54 = vsel %vm103_vm1, %v591_v38, %v1005_v36 }
 0x8a1   :  { %v594_v62 = vsel %vm593_vm7, %v592_v54, %v1010_v48 }
 0x8a2   :  { %v595_v34 = vpack.c.bf16 %v594_v62, %v594_v62 }
 0x8a4   :  { %672 = vmatmul.bf16.vlgmr.msra.gmra.mxu2 %v595_v34 }
 0x927   :  { %v673_v35 = vpop.f32.mrf.mxu2 }
 0x928   :  { %v674_v50 = vadd.f32 %v1011_v49, %v673_v35 }
 0x92a   :  { %v677_v51 = vmax.f32 %v674_v50, 0.0 }
 0x92c   :  { %679 = vst.msk [vmem:[%s1620_s8] sm:$0x3] %vm536_vm2, %v677_v51 }
 0x92f   :  { %v675_v52 = vpop.f32.mrf.mxu2 }
 0x930   :  { %1060 = dma.done.wait [#allocation3], 288  }
 0x931   :  { %1061 = vsyncadd [#allocation3], 4294967008 }
 0x932   :  { %701 = vsyncpa [#allocation3], 1 }

</bundles_post_ra>
